<compile_context>
chip_gen: v5e
topology: v5e:2x2
jax: 0.10.0
libtpu: 0.0.40
codegen_flags: <defaults>
</compile_context>

<pallas_src>
import jax
import jax.numpy as jnp
from jax import lax
from jax.experimental import pallas as pl
from jax.experimental.pallas import tpu as pltpu

# ----------------------------- problem sizes ------------------------------ #
B = 8          # batch (users)
N_ITEMS = 256  # n_item
HID = 128      # encoder/decoder hidden width
LAT = 64       # latent dim (merged mu||logvar head is 2*LAT = 128 lanes)

# ----------------------------- hyper-params ------------------------------- #
TAU_AUG = 1.0
ALPHA = 0.5
ALPHA_AUG = 1.0
RG_AUG = 1.0
TEMPERATURE = 0.2
GUMBEL_BIAS = 1e-4
EPS = 1e-12

OUT_LANES = 128  # lane-dense scalar output row; lanes 0..8 hold the results


# ------------------------------ fused kernel ------------------------------ #
def adv_fused_kernel(
    # inputs
    x_ref, r1_ref, r2_ref, anneal_ref,
    wge1_ref, bge1_ref, wgmv_ref, bgmv_ref, wgd1_ref, bgd1_ref, wgd2_ref, bgd2_ref,
    wde1_ref, bde1_ref, wdmv_ref, bdmv_ref, wdd1_ref, bdd1_ref, wdd2_ref, bdd2_ref,
    # output
    out_ref,
    # scratch
    stack_ref,
):
    x = x_ref[...]

    def l2norm(v):
        return v * lax.rsqrt(jnp.sum(v * v, axis=-1, keepdims=True) + EPS)

    def mm(a, b):
        return jnp.dot(a, b, preferred_element_type=jnp.float32)

    xn = l2norm(x)

    # ---------------- G forward on x (eval mode: z = mu), computed ONCE ----
    h_g = jnp.tanh(mm(xn, wge1_ref[...]) + bge1_ref[...])            # (B, HID)
    muv_g = mm(h_g, wgmv_ref[...]) + bgmv_ref[...]                   # (B, 2*LAT)
    mu_g = muv_g[:, :LAT]                                            # (B, LAT)
    hd_g = jnp.tanh(mm(mu_g, wgd1_ref[...]) + bgd1_ref[...])         # (B, HID)
    aug_logits = mm(hd_g, wgd2_ref[...]) + bgd2_ref[...]             # (B, N_ITEMS)

    # ---------------- GumbelMax + aug graphs (binary x, algebraic form) ----
    def gumbel_graph(u):
        delta = (GUMBEL_BIAS - (1.0 - GUMBEL_BIAS)) * u + (1.0 - GUMBEL_BIAS)
        p_k = jnp.log(delta) - jnp.log(1.0 - delta) + aug_logits
        g = jax.nn.sigmoid(p_k / TAU_AUG)
        # x==1 -> g ; x==0 -> 1-g   (identical to the masked-assignment form)
        return x * g + (1.0 - x) * (1.0 - g)

    aug1 = gumbel_graph(r1_ref[...])   # phase-1 augmented graph
    aug2 = gumbel_graph(r2_ref[...])   # phase-2 augmented graph

    # ---------------- D encoder: 3 inputs stacked into one matmul ----------
    stack_ref[0:B, :] = xn
    stack_ref[B:2 * B, :] = l2norm(aug1)
    stack_ref[2 * B:3 * B, :] = l2norm(aug2)
    stacked = stack_ref[...]                                         # (3B, N_ITEMS)

    h_d = jnp.tanh(mm(stacked, wde1_ref[...]) + bde1_ref[...])       # (3B, HID)
    muv_all = mm(h_d, wdmv_ref[...]) + bdmv_ref[...]                 # (3B, 2*LAT)

    mu_d = muv_all[:B, :LAT]          # == D.encode(x) == z_ori (eval mode)
    logvar_d = muv_all[:B, LAT:]
    z_aug1 = muv_all[B:2 * B, :LAT]   # D.encode(aug_graph)  (phase 1)
    z_aug2 = muv_all[2 * B:, :LAT]    # D.encode(aug_graph)  (phase 2)

    # ---------------- D decoder for x (z = mu_d) ---------------------------
    hd_d = jnp.tanh(mm(mu_d, wdd1_ref[...]) + bdd1_ref[...])         # (B, HID)
    logits_d = mm(hd_d, wdd2_ref[...]) + bdd2_ref[...]               # (B, N_ITEMS)

    # ---------------- multinomial recon loss + KL --------------------------
    m = jnp.max(logits_d, axis=-1, keepdims=True)
    lse = m + jnp.log(jnp.sum(jnp.exp(logits_d - m), axis=-1, keepdims=True))
    log_softmax = logits_d - lse
    recon = -jnp.sum(log_softmax * x, keepdims=True) / B             # (1,1)
    kl = -0.5 * jnp.sum(1.0 + logvar_d - mu_d * mu_d - jnp.exp(logvar_d),
                        keepdims=True) / B                           # (1,1)

    # ---------------- InfoNCE-style mutual information ---------------------
    def calc_i(z1, z2):
        n1 = jnp.sqrt(jnp.sum(z1 * z1, axis=-1, keepdims=True) + EPS)   # (B,1)
        n2 = jnp.sqrt(jnp.sum(z2 * z2, axis=-1, keepdims=True) + EPS)   # (B,1)
        sim = lax.dot_general(z1, z2, (((1,), (1,)), ((), ())),
                              preferred_element_type=jnp.float32)       # (B,B)
        den = lax.dot_general(n1, n2, (((1,), (1,)), ((), ())),
                              preferred_element_type=jnp.float32)       # (B,B)
        sim = jnp.exp(sim / den / TEMPERATURE)
        eye = (lax.broadcasted_iota(jnp.int32, (B, B), 0)
               == lax.broadcasted_iota(jnp.int32, (B, B), 1)).astype(jnp.float32)
        pos_col = jnp.sum(sim * eye, axis=1, keepdims=True)             # (B,1) diag
        pos_row = jnp.sum(sim * eye, axis=0, keepdims=True)             # (1,B) diag
        row_sum = jnp.sum(sim, axis=1, keepdims=True)                   # (B,1)
        col_sum = jnp.sum(sim, axis=0, keepdims=True)                   # (1,B)
        loss0 = jnp.sum(jnp.log(pos_row / (col_sum - pos_row)), keepdims=True) / B
        loss1 = jnp.sum(jnp.log(pos_col / (row_sum - pos_col)), keepdims=True) / B
        return 0.5 * (loss0 + loss1)                                    # (1,1)

    mi_aug = calc_i(mu_d, z_aug1)   # calc_I(z_ori, z_aug)        (phase 1)
    mi_rec = calc_i(mu_d, z_aug2)   # calc_I(mu from D(x), z_aug) (phase 2)

    # ---------------- augmentation regularizer (phase-1 graph) -------------
    mask0 = (x == 0.0).astype(jnp.float32)
    mask1 = (x == 1.0).astype(jnp.float32)
    cnt0 = jnp.maximum(jnp.sum(mask0, keepdims=True), 1.0)
    cnt1 = jnp.maximum(jnp.sum(mask1, keepdims=True), 1.0)
    add = jnp.sum(jnp.abs(aug1) * mask0, keepdims=True) / cnt0           # (1,1)
    drop = jnp.sum(jnp.abs(1.0 - aug1) * mask1, keepdims=True) / cnt1    # (1,1)
    reg_aug = add + drop

    # ---------------- composite losses --------------------------------------
    anneal = anneal_ref[...]                                             # (1,1)
    aug_loss = ALPHA_AUG * mi_aug + RG_AUG * reg_aug
    rec_loss = recon + anneal * kl - ALPHA * mi_rec

    # ---------------- pack nine scalars into one lane-dense row -------------
    lanes = lax.broadcasted_iota(jnp.int32, (1, OUT_LANES), 1)
    vals = (rec_loss, aug_loss, mi_rec, mi_aug, recon, kl, reg_aug, drop, add)
    packed = jnp.zeros((1, OUT_LANES), jnp.float32)
    for i, v in enumerate(vals):
        packed = packed + jnp.where(lanes == i, v, 0.0)
    out_ref[...] = packed


# ------------------------------ JAX wrapper -------------------------------- #
def adv_forward(x, anneal, g_params, d_params, rand1, rand2):
    """Forward-only reproduction of ADV.forward (is_train=False), one kernel.

    Returns (rec_loss, aug_loss, mi_rec, mi_aug, recon, kl, reg_aug, drop, add).
    """
    (wge1, bge1, wgmu, bgmu, wglv, bglv, wgd1, bgd1, wgd2, bgd2) = g_params
    (wde1, bde1, wdmu, bdmu, wdlv, bdlv, wdd1, bdd1, wdd2, bdd2) = d_params

    # merge mu||logvar heads into one lane-dense (HID, 2*LAT) weight (host side,
    # one-time layout plumbing).
    wgmv = jnp.concatenate([wgmu, wglv], axis=1)
    bgmv = jnp.concatenate([bgmu, bglv], axis=1)
    wdmv = jnp.concatenate([wdmu, wdlv], axis=1)
    bdmv = jnp.concatenate([bdmu, bdlv], axis=1)
    anneal_arr = jnp.full((1, 1), anneal, jnp.float32)

    ins = (x, rand1, rand2, anneal_arr,
           wge1, bge1, wgmv, bgmv, wgd1, bgd1, wgd2, bgd2,
           wde1, bde1, wdmv, bdmv, wdd1, bdd1, wdd2, bdd2)

    vspec = pl.BlockSpec(memory_space=pltpu.MemorySpace.VMEM)
    out = pl.pallas_call(
        adv_fused_kernel,
        out_shape=jax.ShapeDtypeStruct((1, OUT_LANES), jnp.float32),
        in_specs=[vspec] * len(ins),
        out_specs=vspec,
        scratch_shapes=[pltpu.VMEM((3 * B, N_ITEMS), jnp.float32)],
    )(*ins)

    return tuple(out[0, i] for i in range(9))


adv_forward_jit = jax.jit(adv_forward)


# ------------------------------ parameter init ----------------------------- #
def init_vae_params(key):
    ks = jax.random.split(key, 6)
    s = 0.05
    we1 = s * jax.random.normal(ks[0], (N_ITEMS, HID), jnp.float32)
    be1 = jnp.zeros((1, HID), jnp.float32)
    wmu = s * jax.random.normal(ks[1], (HID, LAT), jnp.float32)
    bmu = jnp.zeros((1, LAT), jnp.float32)
    wlv = s * jax.random.normal(ks[2], (HID, LAT), jnp.float32)
    blv = jnp.zeros((1, LAT), jnp.float32)
    wd1 = s * jax.random.normal(ks[3], (LAT, HID), jnp.float32)
    bd1 = jnp.zeros((1, HID), jnp.float32)
    wd2 = s * jax.random.normal(ks[4], (HID, N_ITEMS), jnp.float32)
    bd2 = jnp.zeros((1, N_ITEMS), jnp.float32)
    return (we1, be1, wmu, bmu, wlv, blv, wd1, bd1, wd2, bd2)


# ---------------------------------- main ----------------------------------- #
if __name__ == "__main__":
    key = jax.random.PRNGKey(0)
    kx, kg, kd, kr1, kr2 = jax.random.split(key, 5)

    # binary user-item interaction matrix (values are exactly 0.0 / 1.0)
    x = (jax.random.uniform(kx, (B, N_ITEMS)) < 0.3).astype(jnp.float32)

    g_params = init_vae_params(kg)   # generator (aug=True)
    d_params = init_vae_params(kd)   # discriminator

    # GumbelMax's torch.rand(...) equivalents (deterministic RNG)
    rand1 = jax.random.uniform(kr1, (B, N_ITEMS), dtype=jnp.float32)
    rand2 = jax.random.uniform(kr2, (B, N_ITEMS), dtype=jnp.float32)

    anneal = 0.2
    outs = adv_forward_jit(x, anneal, g_params, d_params, rand1, rand2)
    outs = jax.block_until_ready(outs)

    names = ("rec_loss", "aug_loss", "mi_rec", "mi_aug", "recon",
             "kl", "reg_aug", "drop", "add")
    for n, v in zip(names, outs):
        assert bool(jnp.isfinite(v)), f"{n} is not finite: {v}"

    print("KERNEL_OK")
</pallas_src>

<mosaic_0001>
module attributes {stable_mosaic.version = 11 : i64} {
  func.func @adv_fused_kernel(%arg0: memref<8x256xf32, #tpu.memory_space<vmem>>, %arg1: memref<8x256xf32, #tpu.memory_space<vmem>>, %arg2: memref<8x256xf32, #tpu.memory_space<vmem>>, %arg3: memref<1x1xf32, #tpu.memory_space<vmem>>, %arg4: memref<256x128xf32, #tpu.memory_space<vmem>>, %arg5: memref<1x128xf32, #tpu.memory_space<vmem>>, %arg6: memref<128x128xf32, #tpu.memory_space<vmem>>, %arg7: memref<1x128xf32, #tpu.memory_space<vmem>>, %arg8: memref<64x128xf32, #tpu.memory_space<vmem>>, %arg9: memref<1x128xf32, #tpu.memory_space<vmem>>, %arg10: memref<128x256xf32, #tpu.memory_space<vmem>>, %arg11: memref<1x256xf32, #tpu.memory_space<vmem>>, %arg12: memref<256x128xf32, #tpu.memory_space<vmem>>, %arg13: memref<1x128xf32, #tpu.memory_space<vmem>>, %arg14: memref<128x128xf32, #tpu.memory_space<vmem>>, %arg15: memref<1x128xf32, #tpu.memory_space<vmem>>, %arg16: memref<64x128xf32, #tpu.memory_space<vmem>>, %arg17: memref<1x128xf32, #tpu.memory_space<vmem>>, %arg18: memref<128x256xf32, #tpu.memory_space<vmem>>, %arg19: memref<1x256xf32, #tpu.memory_space<vmem>>, %arg20: memref<1x128xf32, #tpu.memory_space<vmem>>, %arg21: memref<24x256xf32, #tpu.memory_space<vmem>>) attributes {dimension_semantics = [], scalar_prefetch = 0 : i64, scratch_operands = 1 : i64, tpu.core_type = #tpu.core_type<tc>} {
    %c0 = arith.constant 0 : index
    %c0_0 = arith.constant 0 : index
    %0 = vector.load %arg0[%c0, %c0_0] : memref<8x256xf32, #tpu.memory_space<vmem>>, vector<8x256xf32>
    %1 = arith.mulf %0, %0 : vector<8x256xf32>
    %cst = arith.constant dense<0.000000e+00> : vector<8xf32>
    %2 = vector.multi_reduction <add>, %1, %cst [1] : vector<8x256xf32> to vector<8xf32>
    %3 = vector.shape_cast %2 : vector<8xf32> to vector<8x1xf32>
    %cst_1 = arith.constant 9.99999996E-13 : f32
    %4 = vector.broadcast %cst_1 : f32 to vector<8x1xf32>
    %5 = arith.addf %3, %4 : vector<8x1xf32>
    %6 = math.rsqrt %5 : vector<8x1xf32>
    %7 = vector.broadcast %6 : vector<8x1xf32> to vector<8x256xf32>
    %8 = arith.mulf %0, %7 : vector<8x256xf32>
    %c0_2 = arith.constant 0 : index
    %c0_3 = arith.constant 0 : index
    %9 = vector.load %arg4[%c0_2, %c0_3] : memref<256x128xf32, #tpu.memory_space<vmem>>, vector<256x128xf32>
    %cst_4 = arith.constant dense<0.000000e+00> : vector<8x128xf32>
    %10 = tpu.matmul %8, %9, %cst_4 {dimension_numbers = #tpu.dot_dimension_numbers<[1], [0], [0], [1], [0, 0, 1, 1], [], []>} : vector<8x256xf32>, vector<256x128xf32>, vector<8x128xf32> -> vector<8x128xf32>
    %c0_5 = arith.constant 0 : index
    %c0_6 = arith.constant 0 : index
    %11 = vector.load %arg5[%c0_5, %c0_6] : memref<1x128xf32, #tpu.memory_space<vmem>>, vector<1x128xf32>
    %12 = vector.broadcast %11 : vector<1x128xf32> to vector<8x128xf32>
    %13 = arith.addf %10, %12 : vector<8x128xf32>
    %14 = math.tanh %13 : vector<8x128xf32>
    %c0_7 = arith.constant 0 : index
    %c0_8 = arith.constant 0 : index
    %15 = vector.load %arg6[%c0_7, %c0_8] : memref<128x128xf32, #tpu.memory_space<vmem>>, vector<128x128xf32>
    %cst_9 = arith.constant dense<0.000000e+00> : vector<8x128xf32>
    %16 = tpu.matmul %14, %15, %cst_9 {dimension_numbers = #tpu.dot_dimension_numbers<[1], [0], [0], [1], [0, 0, 1, 1], [], []>} : vector<8x128xf32>, vector<128x128xf32>, vector<8x128xf32> -> vector<8x128xf32>
    %c0_10 = arith.constant 0 : index
    %c0_11 = arith.constant 0 : index
    %17 = vector.load %arg7[%c0_10, %c0_11] : memref<1x128xf32, #tpu.memory_space<vmem>>, vector<1x128xf32>
    %18 = vector.broadcast %17 : vector<1x128xf32> to vector<8x128xf32>
    %19 = arith.addf %16, %18 : vector<8x128xf32>
    %20 = vector.extract_strided_slice %19 {offsets = [0, 0], sizes = [8, 64], strides = [1, 1]} : vector<8x128xf32> to vector<8x64xf32>
    %c0_12 = arith.constant 0 : index
    %c0_13 = arith.constant 0 : index
    %21 = vector.load %arg8[%c0_12, %c0_13] : memref<64x128xf32, #tpu.memory_space<vmem>>, vector<64x128xf32>
    %cst_14 = arith.constant dense<0.000000e+00> : vector<8x128xf32>
    %22 = tpu.matmul %20, %21, %cst_14 {dimension_numbers = #tpu.dot_dimension_numbers<[1], [0], [0], [1], [0, 0, 1, 1], [], []>} : vector<8x64xf32>, vector<64x128xf32>, vector<8x128xf32> -> vector<8x128xf32>
    %c0_15 = arith.constant 0 : index
    %c0_16 = arith.constant 0 : index
    %23 = vector.load %arg9[%c0_15, %c0_16] : memref<1x128xf32, #tpu.memory_space<vmem>>, vector<1x128xf32>
    %24 = vector.broadcast %23 : vector<1x128xf32> to vector<8x128xf32>
    %25 = arith.addf %22, %24 : vector<8x128xf32>
    %26 = math.tanh %25 : vector<8x128xf32>
    %c0_17 = arith.constant 0 : index
    %c0_18 = arith.constant 0 : index
    %27 = vector.load %arg10[%c0_17, %c0_18] : memref<128x256xf32, #tpu.memory_space<vmem>>, vector<128x256xf32>
    %cst_19 = arith.constant dense<0.000000e+00> : vector<8x256xf32>
    %28 = tpu.matmul %26, %27, %cst_19 {dimension_numbers = #tpu.dot_dimension_numbers<[1], [0], [0], [1], [0, 0, 1, 1], [], []>} : vector<8x128xf32>, vector<128x256xf32>, vector<8x256xf32> -> vector<8x256xf32>
    %c0_20 = arith.constant 0 : index
    %c0_21 = arith.constant 0 : index
    %29 = vector.load %arg11[%c0_20, %c0_21] : memref<1x256xf32, #tpu.memory_space<vmem>>, vector<1x256xf32>
    %30 = vector.broadcast %29 : vector<1x256xf32> to vector<8x256xf32>
    %31 = arith.addf %28, %30 : vector<8x256xf32>
    %c0_22 = arith.constant 0 : index
    %c0_23 = arith.constant 0 : index
    %32 = vector.load %arg1[%c0_22, %c0_23] : memref<8x256xf32, #tpu.memory_space<vmem>>, vector<8x256xf32>
    %cst_24 = arith.constant -9.998000e-01 : f32
    %33 = vector.broadcast %cst_24 : f32 to vector<8x256xf32>
    %34 = arith.mulf %33, %32 : vector<8x256xf32>
    %cst_25 = arith.constant 0.999899983 : f32
    %35 = vector.broadcast %cst_25 : f32 to vector<8x256xf32>
    %36 = arith.addf %34, %35 : vector<8x256xf32>
    %37 = math.log %36 : vector<8x256xf32>
    %cst_26 = arith.constant 1.000000e+00 : f32
    %38 = vector.broadcast %cst_26 : f32 to vector<8x256xf32>
    %39 = arith.subf %38, %36 : vector<8x256xf32>
    %40 = math.log %39 : vector<8x256xf32>
    %41 = arith.subf %37, %40 : vector<8x256xf32>
    %42 = arith.addf %41, %31 : vector<8x256xf32>
    %cst_27 = arith.constant 1.000000e+00 : f32
    %43 = vector.broadcast %cst_27 : f32 to vector<8x256xf32>
    %44 = arith.divf %42, %43 : vector<8x256xf32>
    %45 = arith.negf %44 : vector<8x256xf32>
    %46 = math.exp %45 : vector<8x256xf32>
    %cst_28 = arith.constant 1.000000e+00 : f32
    %47 = vector.broadcast %cst_28 : f32 to vector<8x256xf32>
    %48 = arith.addf %47, %46 : vector<8x256xf32>
    %49 = arith.divf %47, %48 : vector<8x256xf32>
    %50 = arith.mulf %0, %49 : vector<8x256xf32>
    %cst_29 = arith.constant 1.000000e+00 : f32
    %51 = vector.broadcast %cst_29 : f32 to vector<8x256xf32>
    %52 = arith.subf %51, %0 : vector<8x256xf32>
    %cst_30 = arith.constant 1.000000e+00 : f32
    %53 = vector.broadcast %cst_30 : f32 to vector<8x256xf32>
    %54 = arith.subf %53, %49 : vector<8x256xf32>
    %55 = arith.mulf %52, %54 : vector<8x256xf32>
    %56 = arith.addf %50, %55 : vector<8x256xf32>
    %c0_31 = arith.constant 0 : index
    %c0_32 = arith.constant 0 : index
    %57 = vector.load %arg2[%c0_31, %c0_32] : memref<8x256xf32, #tpu.memory_space<vmem>>, vector<8x256xf32>
    %cst_33 = arith.constant -9.998000e-01 : f32
    %58 = vector.broadcast %cst_33 : f32 to vector<8x256xf32>
    %59 = arith.mulf %58, %57 : vector<8x256xf32>
    %cst_34 = arith.constant 0.999899983 : f32
    %60 = vector.broadcast %cst_34 : f32 to vector<8x256xf32>
    %61 = arith.addf %59, %60 : vector<8x256xf32>
    %62 = math.log %61 : vector<8x256xf32>
    %cst_35 = arith.constant 1.000000e+00 : f32
    %63 = vector.broadcast %cst_35 : f32 to vector<8x256xf32>
    %64 = arith.subf %63, %61 : vector<8x256xf32>
    %65 = math.log %64 : vector<8x256xf32>
    %66 = arith.subf %62, %65 : vector<8x256xf32>
    %67 = arith.addf %66, %31 : vector<8x256xf32>
    %cst_36 = arith.constant 1.000000e+00 : f32
    %68 = vector.broadcast %cst_36 : f32 to vector<8x256xf32>
    %69 = arith.divf %67, %68 : vector<8x256xf32>
    %70 = arith.negf %69 : vector<8x256xf32>
    %71 = math.exp %70 : vector<8x256xf32>
    %cst_37 = arith.constant 1.000000e+00 : f32
    %72 = vector.broadcast %cst_37 : f32 to vector<8x256xf32>
    %73 = arith.addf %72, %71 : vector<8x256xf32>
    %74 = arith.divf %72, %73 : vector<8x256xf32>
    %75 = arith.mulf %0, %74 : vector<8x256xf32>
    %cst_38 = arith.constant 1.000000e+00 : f32
    %76 = vector.broadcast %cst_38 : f32 to vector<8x256xf32>
    %77 = arith.subf %76, %0 : vector<8x256xf32>
    %cst_39 = arith.constant 1.000000e+00 : f32
    %78 = vector.broadcast %cst_39 : f32 to vector<8x256xf32>
    %79 = arith.subf %78, %74 : vector<8x256xf32>
    %80 = arith.mulf %77, %79 : vector<8x256xf32>
    %81 = arith.addf %75, %80 : vector<8x256xf32>
    %c0_40 = arith.constant 0 : index
    %c0_41 = arith.constant 0 : index
    %82 = vector.load %arg21[%c0_40, %c0_41] : memref<24x256xf32, #tpu.memory_space<vmem>>, vector<8x256xf32>
    tpu.vector_store %arg21[%c0_40, %c0_41], %8 {strides = array<i32>} : memref<24x256xf32, #tpu.memory_space<vmem>>, vector<8x256xf32>,
    %83 = arith.mulf %56, %56 : vector<8x256xf32>
    %cst_42 = arith.constant dense<0.000000e+00> : vector<8xf32>
    %84 = vector.multi_reduction <add>, %83, %cst_42 [1] : vector<8x256xf32> to vector<8xf32>
    %85 = vector.shape_cast %84 : vector<8xf32> to vector<8x1xf32>
    %cst_43 = arith.constant 9.99999996E-13 : f32
    %86 = vector.broadcast %cst_43 : f32 to vector<8x1xf32>
    %87 = arith.addf %85, %86 : vector<8x1xf32>
    %88 = math.rsqrt %87 : vector<8x1xf32>
    %89 = vector.broadcast %88 : vector<8x1xf32> to vector<8x256xf32>
    %90 = arith.mulf %56, %89 : vector<8x256xf32>
    %c8 = arith.constant 8 : index
    %c0_44 = arith.constant 0 : index
    %91 = vector.load %arg21[%c8, %c0_44] : memref<24x256xf32, #tpu.memory_space<vmem>>, vector<8x256xf32>
    tpu.vector_store %arg21[%c8, %c0_44], %90 {strides = array<i32>} : memref<24x256xf32, #tpu.memory_space<vmem>>, vector<8x256xf32>,
    %92 = arith.mulf %81, %81 : vector<8x256xf32>
    %cst_45 = arith.constant dense<0.000000e+00> : vector<8xf32>
    %93 = vector.multi_reduction <add>, %92, %cst_45 [1] : vector<8x256xf32> to vector<8xf32>
    %94 = vector.shape_cast %93 : vector<8xf32> to vector<8x1xf32>
    %cst_46 = arith.constant 9.99999996E-13 : f32
    %95 = vector.broadcast %cst_46 : f32 to vector<8x1xf32>
    %96 = arith.addf %94, %95 : vector<8x1xf32>
    %97 = math.rsqrt %96 : vector<8x1xf32>
    %98 = vector.broadcast %97 : vector<8x1xf32> to vector<8x256xf32>
    %99 = arith.mulf %81, %98 : vector<8x256xf32>
    %c16 = arith.constant 16 : index
    %c0_47 = arith.constant 0 : index
    %100 = vector.load %arg21[%c16, %c0_47] : memref<24x256xf32, #tpu.memory_space<vmem>>, vector<8x256xf32>
    tpu.vector_store %arg21[%c16, %c0_47], %99 {strides = array<i32>} : memref<24x256xf32, #tpu.memory_space<vmem>>, vector<8x256xf32>,
    %c0_48 = arith.constant 0 : index
    %c0_49 = arith.constant 0 : index
    %101 = vector.load %arg21[%c0_48, %c0_49] : memref<24x256xf32, #tpu.memory_space<vmem>>, vector<24x256xf32>
    %c0_50 = arith.constant 0 : index
    %c0_51 = arith.constant 0 : index
    %102 = vector.load %arg12[%c0_50, %c0_51] : memref<256x128xf32, #tpu.memory_space<vmem>>, vector<256x128xf32>
    %cst_52 = arith.constant dense<0.000000e+00> : vector<24x128xf32>
    %103 = tpu.matmul %101, %102, %cst_52 {dimension_numbers = #tpu.dot_dimension_numbers<[1], [0], [0], [1], [0, 0, 1, 1], [], []>} : vector<24x256xf32>, vector<256x128xf32>, vector<24x128xf32> -> vector<24x128xf32>
    %c0_53 = arith.constant 0 : index
    %c0_54 = arith.constant 0 : index
    %104 = vector.load %arg13[%c0_53, %c0_54] : memref<1x128xf32, #tpu.memory_space<vmem>>, vector<1x128xf32>
    %105 = vector.broadcast %104 : vector<1x128xf32> to vector<24x128xf32>
    %106 = arith.addf %103, %105 : vector<24x128xf32>
    %107 = math.tanh %106 : vector<24x128xf32>
    %c0_55 = arith.constant 0 : index
    %c0_56 = arith.constant 0 : index
    %108 = vector.load %arg14[%c0_55, %c0_56] : memref<128x128xf32, #tpu.memory_space<vmem>>, vector<128x128xf32>
    %cst_57 = arith.constant dense<0.000000e+00> : vector<24x128xf32>
    %109 = tpu.matmul %107, %108, %cst_57 {dimension_numbers = #tpu.dot_dimension_numbers<[1], [0], [0], [1], [0, 0, 1, 1], [], []>} : vector<24x128xf32>, vector<128x128xf32>, vector<24x128xf32> -> vector<24x128xf32>
    %c0_58 = arith.constant 0 : index
    %c0_59 = arith.constant 0 : index
    %110 = vector.load %arg15[%c0_58, %c0_59] : memref<1x128xf32, #tpu.memory_space<vmem>>, vector<1x128xf32>
    %111 = vector.broadcast %110 : vector<1x128xf32> to vector<24x128xf32>
    %112 = arith.addf %109, %111 : vector<24x128xf32>
    %113 = vector.extract_strided_slice %112 {offsets = [0, 0], sizes = [8, 64], strides = [1, 1]} : vector<24x128xf32> to vector<8x64xf32>
    %114 = vector.extract_strided_slice %112 {offsets = [0, 64], sizes = [8, 64], strides = [1, 1]} : vector<24x128xf32> to vector<8x64xf32>
    %115 = vector.extract_strided_slice %112 {offsets = [8, 0], sizes = [8, 64], strides = [1, 1]} : vector<24x128xf32> to vector<8x64xf32>
    %116 = vector.extract_strided_slice %112 {offsets = [16, 0], sizes = [8, 64], strides = [1, 1]} : vector<24x128xf32> to vector<8x64xf32>
    %c0_60 = arith.constant 0 : index
    %c0_61 = arith.constant 0 : index
    %117 = vector.load %arg16[%c0_60, %c0_61] : memref<64x128xf32, #tpu.memory_space<vmem>>, vector<64x128xf32>
    %cst_62 = arith.constant dense<0.000000e+00> : vector<8x128xf32>
    %118 = tpu.matmul %113, %117, %cst_62 {dimension_numbers = #tpu.dot_dimension_numbers<[1], [0], [0], [1], [0, 0, 1, 1], [], []>} : vector<8x64xf32>, vector<64x128xf32>, vector<8x128xf32> -> vector<8x128xf32>
    %c0_63 = arith.constant 0 : index
    %c0_64 = arith.constant 0 : index
    %119 = vector.load %arg17[%c0_63, %c0_64] : memref<1x128xf32, #tpu.memory_space<vmem>>, vector<1x128xf32>
    %120 = vector.broadcast %119 : vector<1x128xf32> to vector<8x128xf32>
    %121 = arith.addf %118, %120 : vector<8x128xf32>
    %122 = math.tanh %121 : vector<8x128xf32>
    %c0_65 = arith.constant 0 : index
    %c0_66 = arith.constant 0 : index
    %123 = vector.load %arg18[%c0_65, %c0_66] : memref<128x256xf32, #tpu.memory_space<vmem>>, vector<128x256xf32>
    %cst_67 = arith.constant dense<0.000000e+00> : vector<8x256xf32>
    %124 = tpu.matmul %122, %123, %cst_67 {dimension_numbers = #tpu.dot_dimension_numbers<[1], [0], [0], [1], [0, 0, 1, 1], [], []>} : vector<8x128xf32>, vector<128x256xf32>, vector<8x256xf32> -> vector<8x256xf32>
    %c0_68 = arith.constant 0 : index
    %c0_69 = arith.constant 0 : index
    %125 = vector.load %arg19[%c0_68, %c0_69] : memref<1x256xf32, #tpu.memory_space<vmem>>, vector<1x256xf32>
    %126 = vector.broadcast %125 : vector<1x256xf32> to vector<8x256xf32>
    %127 = arith.addf %124, %126 : vector<8x256xf32>
    %cst_70 = arith.constant dense<0xFF800000> : vector<8xf32>
    %128 = vector.multi_reduction <maximumf>, %127, %cst_70 [1] : vector<8x256xf32> to vector<8xf32>
    %129 = vector.shape_cast %128 : vector<8xf32> to vector<8x1xf32>
    %130 = vector.broadcast %129 : vector<8x1xf32> to vector<8x256xf32>
    %131 = arith.subf %127, %130 : vector<8x256xf32>
    %132 = math.exp %131 : vector<8x256xf32>
    %cst_71 = arith.constant dense<0.000000e+00> : vector<8xf32>
    %133 = vector.multi_reduction <add>, %132, %cst_71 [1] : vector<8x256xf32> to vector<8xf32>
    %134 = vector.shape_cast %133 : vector<8xf32> to vector<8x1xf32>
    %135 = math.log %134 : vector<8x1xf32>
    %136 = arith.addf %129, %135 : vector<8x1xf32>
    %137 = vector.broadcast %136 : vector<8x1xf32> to vector<8x256xf32>
    %138 = arith.subf %127, %137 : vector<8x256xf32>
    %139 = arith.mulf %138, %0 : vector<8x256xf32>
    %140 = vector.shape_cast %139 : vector<8x256xf32> to vector<1x8x256xf32>
    %cst_72 = arith.constant dense<0.000000e+00> : vector<1xf32>
    %141 = vector.multi_reduction <add>, %140, %cst_72 [1, 2] : vector<1x8x256xf32> to vector<1xf32>
    %142 = vector.shape_cast %141 : vector<1xf32> to vector<1x1x1xf32>
    %143 = vector.extract %142[0, 0, 0] : f32 from vector<1x1x1xf32>
    %144 = vector.broadcast %143 : f32 to vector<1x1xf32>
    %cst_73 = arith.constant 0.000000e+00 : f32
    %145 = vector.broadcast %cst_73 : f32 to vector<1x1xf32>
    %146 = arith.subf %145, %144 : vector<1x1xf32>
    %cst_74 = arith.constant 8.000000e+00 : f32
    %147 = vector.broadcast %cst_74 : f32 to vector<1x1xf32>
    %148 = arith.divf %146, %147 : vector<1x1xf32>
    %cst_75 = arith.constant 1.000000e+00 : f32
    %149 = vector.broadcast %cst_75 : f32 to vector<8x64xf32>
    %150 = arith.addf %149, %114 : vector<8x64xf32>
    %151 = arith.mulf %113, %113 : vector<8x64xf32>
    %152 = arith.subf %150, %151 : vector<8x64xf32>
    %153 = math.exp %114 : vector<8x64xf32>
    %154 = arith.subf %152, %153 : vector<8x64xf32>
    %155 = vector.shape_cast %154 : vector<8x64xf32> to vector<1x8x64xf32>
    %cst_76 = arith.constant dense<0.000000e+00> : vector<1xf32>
    %156 = vector.multi_reduction <add>, %155, %cst_76 [1, 2] : vector<1x8x64xf32> to vector<1xf32>
    %157 = vector.shape_cast %156 : vector<1xf32> to vector<1x1x1xf32>
    %158 = vector.extract %157[0, 0, 0] : f32 from vector<1x1x1xf32>
    %159 = vector.broadcast %158 : f32 to vector<1x1xf32>
    %cst_77 = arith.constant -5.000000e-01 : f32
    %160 = vector.broadcast %cst_77 : f32 to vector<1x1xf32>
    %161 = arith.mulf %160, %159 : vector<1x1xf32>
    %cst_78 = arith.constant 8.000000e+00 : f32
    %162 = vector.broadcast %cst_78 : f32 to vector<1x1xf32>
    %163 = arith.divf %161, %162 : vector<1x1xf32>
    %164 = arith.mulf %113, %113 : vector<8x64xf32>
    %cst_79 = arith.constant dense<0.000000e+00> : vector<8xf32>
    %165 = vector.multi_reduction <add>, %164, %cst_79 [1] : vector<8x64xf32> to vector<8xf32>
    %166 = vector.shape_cast %165 : vector<8xf32> to vector<8x1xf32>
    %cst_80 = arith.constant 9.99999996E-13 : f32
    %167 = vector.broadcast %cst_80 : f32 to vector<8x1xf32>
    %168 = arith.addf %166, %167 : vector<8x1xf32>
    %169 = math.sqrt %168 : vector<8x1xf32>
    %170 = arith.mulf %115, %115 : vector<8x64xf32>
    %cst_81 = arith.constant dense<0.000000e+00> : vector<8xf32>
    %171 = vector.multi_reduction <add>, %170, %cst_81 [1] : vector<8x64xf32> to vector<8xf32>
    %172 = vector.shape_cast %171 : vector<8xf32> to vector<8x1xf32>
    %cst_82 = arith.constant 9.99999996E-13 : f32
    %173 = vector.broadcast %cst_82 : f32 to vector<8x1xf32>
    %174 = arith.addf %172, %173 : vector<8x1xf32>
    %175 = math.sqrt %174 : vector<8x1xf32>
    %cst_83 = arith.constant dense<0.000000e+00> : vector<8x8xf32>
    %176 = tpu.matmul %113, %115, %cst_83 {dimension_numbers = #tpu.dot_dimension_numbers<[1], [1], [0], [0], [0, 0, 1, 0], [], []>} : vector<8x64xf32>, vector<8x64xf32>, vector<8x8xf32> -> vector<8x8xf32>
    %cst_84 = arith.constant dense<0.000000e+00> : vector<8x8xf32>
    %177 = tpu.matmul %169, %175, %cst_84 {dimension_numbers = #tpu.dot_dimension_numbers<[1], [1], [0], [0], [0, 0, 1, 0], [], []>} : vector<8x1xf32>, vector<8x1xf32>, vector<8x8xf32> -> vector<8x8xf32>
    %178 = arith.divf %176, %177 : vector<8x8xf32>
    %cst_85 = arith.constant 2.000000e-01 : f32
    %179 = vector.broadcast %cst_85 : f32 to vector<8x8xf32>
    %180 = arith.divf %178, %179 : vector<8x8xf32>
    %181 = math.exp %180 : vector<8x8xf32>
    %182 = tpu.iota {dimensions = array<i32: 0>} : vector<8x8xi32>
    %183 = tpu.iota {dimensions = array<i32: 1>} : vector<8x8xi32>
    %184 = arith.cmpi eq, %182, %183 : vector<8x8xi32>
    %185 = arith.extui %184 : vector<8x8xi1> to vector<8x8xi32>
    %186 = arith.sitofp %185 : vector<8x8xi32> to vector<8x8xf32>
    %187 = arith.mulf %181, %186 : vector<8x8xf32>
    %cst_86 = arith.constant dense<0.000000e+00> : vector<8xf32>
    %188 = vector.multi_reduction <add>, %187, %cst_86 [1] : vector<8x8xf32> to vector<8xf32>
    %189 = vector.shape_cast %188 : vector<8xf32> to vector<8x1xf32>
    %190 = arith.mulf %181, %186 : vector<8x8xf32>
    %cst_87 = arith.constant dense<0.000000e+00> : vector<8xf32>
    %191 = vector.multi_reduction <add>, %190, %cst_87 [0] : vector<8x8xf32> to vector<8xf32>
    %192 = vector.shape_cast %191 : vector<8xf32> to vector<1x8xf32>
    %cst_88 = arith.constant dense<0.000000e+00> : vector<8xf32>
    %193 = vector.multi_reduction <add>, %181, %cst_88 [1] : vector<8x8xf32> to vector<8xf32>
    %194 = vector.shape_cast %193 : vector<8xf32> to vector<8x1xf32>
    %cst_89 = arith.constant dense<0.000000e+00> : vector<8xf32>
    %195 = vector.multi_reduction <add>, %181, %cst_89 [0] : vector<8x8xf32> to vector<8xf32>
    %196 = vector.shape_cast %195 : vector<8xf32> to vector<1x8xf32>
    %197 = arith.subf %196, %192 : vector<1x8xf32>
    %198 = arith.divf %192, %197 : vector<1x8xf32>
    %199 = math.log %198 : vector<1x8xf32>
    %200 = vector.shape_cast %199 : vector<1x8xf32> to vector<1x1x8xf32>
    %cst_90 = arith.constant dense<0.000000e+00> : vector<1xf32>
    %201 = vector.multi_reduction <add>, %200, %cst_90 [1, 2] : vector<1x1x8xf32> to vector<1xf32>
    %202 = vector.shape_cast %201 : vector<1xf32> to vector<1x1x1xf32>
    %203 = vector.extract %202[0, 0, 0] : f32 from vector<1x1x1xf32>
    %204 = vector.broadcast %203 : f32 to vector<1x1xf32>
    %cst_91 = arith.constant 8.000000e+00 : f32
    %205 = vector.broadcast %cst_91 : f32 to vector<1x1xf32>
    %206 = arith.divf %204, %205 : vector<1x1xf32>
    %207 = arith.subf %194, %189 : vector<8x1xf32>
    %208 = arith.divf %189, %207 : vector<8x1xf32>
    %209 = math.log %208 : vector<8x1xf32>
    %210 = vector.shape_cast %209 : vector<8x1xf32> to vector<1x8x1xf32>
    %cst_92 = arith.constant dense<0.000000e+00> : vector<1xf32>
    %211 = vector.multi_reduction <add>, %210, %cst_92 [1, 2] : vector<1x8x1xf32> to vector<1xf32>
    %212 = vector.shape_cast %211 : vector<1xf32> to vector<1x1x1xf32>
    %213 = vector.extract %212[0, 0, 0] : f32 from vector<1x1x1xf32>
    %214 = vector.broadcast %213 : f32 to vector<1x1xf32>
    %cst_93 = arith.constant 8.000000e+00 : f32
    %215 = vector.broadcast %cst_93 : f32 to vector<1x1xf32>
    %216 = arith.divf %214, %215 : vector<1x1xf32>
    %217 = arith.addf %206, %216 : vector<1x1xf32>
    %cst_94 = arith.constant 5.000000e-01 : f32
    %218 = vector.broadcast %cst_94 : f32 to vector<1x1xf32>
    %219 = arith.mulf %218, %217 : vector<1x1xf32>
    %220 = arith.mulf %113, %113 : vector<8x64xf32>
    %cst_95 = arith.constant dense<0.000000e+00> : vector<8xf32>
    %221 = vector.multi_reduction <add>, %220, %cst_95 [1] : vector<8x64xf32> to vector<8xf32>
    %222 = vector.shape_cast %221 : vector<8xf32> to vector<8x1xf32>
    %cst_96 = arith.constant 9.99999996E-13 : f32
    %223 = vector.broadcast %cst_96 : f32 to vector<8x1xf32>
    %224 = arith.addf %222, %223 : vector<8x1xf32>
    %225 = math.sqrt %224 : vector<8x1xf32>
    %226 = arith.mulf %116, %116 : vector<8x64xf32>
    %cst_97 = arith.constant dense<0.000000e+00> : vector<8xf32>
    %227 = vector.multi_reduction <add>, %226, %cst_97 [1] : vector<8x64xf32> to vector<8xf32>
    %228 = vector.shape_cast %227 : vector<8xf32> to vector<8x1xf32>
    %cst_98 = arith.constant 9.99999996E-13 : f32
    %229 = vector.broadcast %cst_98 : f32 to vector<8x1xf32>
    %230 = arith.addf %228, %229 : vector<8x1xf32>
    %231 = math.sqrt %230 : vector<8x1xf32>
    %cst_99 = arith.constant dense<0.000000e+00> : vector<8x8xf32>
    %232 = tpu.matmul %113, %116, %cst_99 {dimension_numbers = #tpu.dot_dimension_numbers<[1], [1], [0], [0], [0, 0, 1, 0], [], []>} : vector<8x64xf32>, vector<8x64xf32>, vector<8x8xf32> -> vector<8x8xf32>
    %cst_100 = arith.constant dense<0.000000e+00> : vector<8x8xf32>
    %233 = tpu.matmul %225, %231, %cst_100 {dimension_numbers = #tpu.dot_dimension_numbers<[1], [1], [0], [0], [0, 0, 1, 0], [], []>} : vector<8x1xf32>, vector<8x1xf32>, vector<8x8xf32> -> vector<8x8xf32>
    %234 = arith.divf %232, %233 : vector<8x8xf32>
    %cst_101 = arith.constant 2.000000e-01 : f32
    %235 = vector.broadcast %cst_101 : f32 to vector<8x8xf32>
    %236 = arith.divf %234, %235 : vector<8x8xf32>
    %237 = math.exp %236 : vector<8x8xf32>
    %238 = tpu.iota {dimensions = array<i32: 0>} : vector<8x8xi32>
    %239 = tpu.iota {dimensions = array<i32: 1>} : vector<8x8xi32>
    %240 = arith.cmpi eq, %238, %239 : vector<8x8xi32>
    %241 = arith.extui %240 : vector<8x8xi1> to vector<8x8xi32>
    %242 = arith.sitofp %241 : vector<8x8xi32> to vector<8x8xf32>
    %243 = arith.mulf %237, %242 : vector<8x8xf32>
    %cst_102 = arith.constant dense<0.000000e+00> : vector<8xf32>
    %244 = vector.multi_reduction <add>, %243, %cst_102 [1] : vector<8x8xf32> to vector<8xf32>
    %245 = vector.shape_cast %244 : vector<8xf32> to vector<8x1xf32>
    %246 = arith.mulf %237, %242 : vector<8x8xf32>
    %cst_103 = arith.constant dense<0.000000e+00> : vector<8xf32>
    %247 = vector.multi_reduction <add>, %246, %cst_103 [0] : vector<8x8xf32> to vector<8xf32>
    %248 = vector.shape_cast %247 : vector<8xf32> to vector<1x8xf32>
    %cst_104 = arith.constant dense<0.000000e+00> : vector<8xf32>
    %249 = vector.multi_reduction <add>, %237, %cst_104 [1] : vector<8x8xf32> to vector<8xf32>
    %250 = vector.shape_cast %249 : vector<8xf32> to vector<8x1xf32>
    %cst_105 = arith.constant dense<0.000000e+00> : vector<8xf32>
    %251 = vector.multi_reduction <add>, %237, %cst_105 [0] : vector<8x8xf32> to vector<8xf32>
    %252 = vector.shape_cast %251 : vector<8xf32> to vector<1x8xf32>
    %253 = arith.subf %252, %248 : vector<1x8xf32>
    %254 = arith.divf %248, %253 : vector<1x8xf32>
    %255 = math.log %254 : vector<1x8xf32>
    %256 = vector.shape_cast %255 : vector<1x8xf32> to vector<1x1x8xf32>
    %cst_106 = arith.constant dense<0.000000e+00> : vector<1xf32>
    %257 = vector.multi_reduction <add>, %256, %cst_106 [1, 2] : vector<1x1x8xf32> to vector<1xf32>
    %258 = vector.shape_cast %257 : vector<1xf32> to vector<1x1x1xf32>
    %259 = vector.extract %258[0, 0, 0] : f32 from vector<1x1x1xf32>
    %260 = vector.broadcast %259 : f32 to vector<1x1xf32>
    %cst_107 = arith.constant 8.000000e+00 : f32
    %261 = vector.broadcast %cst_107 : f32 to vector<1x1xf32>
    %262 = arith.divf %260, %261 : vector<1x1xf32>
    %263 = arith.subf %250, %245 : vector<8x1xf32>
    %264 = arith.divf %245, %263 : vector<8x1xf32>
    %265 = math.log %264 : vector<8x1xf32>
    %266 = vector.shape_cast %265 : vector<8x1xf32> to vector<1x8x1xf32>
    %cst_108 = arith.constant dense<0.000000e+00> : vector<1xf32>
    %267 = vector.multi_reduction <add>, %266, %cst_108 [1, 2] : vector<1x8x1xf32> to vector<1xf32>
    %268 = vector.shape_cast %267 : vector<1xf32> to vector<1x1x1xf32>
    %269 = vector.extract %268[0, 0, 0] : f32 from vector<1x1x1xf32>
    %270 = vector.broadcast %269 : f32 to vector<1x1xf32>
    %cst_109 = arith.constant 8.000000e+00 : f32
    %271 = vector.broadcast %cst_109 : f32 to vector<1x1xf32>
    %272 = arith.divf %270, %271 : vector<1x1xf32>
    %273 = arith.addf %262, %272 : vector<1x1xf32>
    %cst_110 = arith.constant 5.000000e-01 : f32
    %274 = vector.broadcast %cst_110 : f32 to vector<1x1xf32>
    %275 = arith.mulf %274, %273 : vector<1x1xf32>
    %cst_111 = arith.constant 0.000000e+00 : f32
    %276 = vector.broadcast %cst_111 : f32 to vector<8x256xf32>
    %277 = arith.cmpf oeq, %0, %276 : vector<8x256xf32>
    %278 = arith.extui %277 : vector<8x256xi1> to vector<8x256xi32>
    %279 = arith.sitofp %278 : vector<8x256xi32> to vector<8x256xf32>
    %cst_112 = arith.constant 1.000000e+00 : f32
    %280 = vector.broadcast %cst_112 : f32 to vector<8x256xf32>
    %281 = arith.cmpf oeq, %0, %280 : vector<8x256xf32>
    %282 = arith.extui %281 : vector<8x256xi1> to vector<8x256xi32>
    %283 = arith.sitofp %282 : vector<8x256xi32> to vector<8x256xf32>
    %284 = vector.shape_cast %279 : vector<8x256xf32> to vector<1x8x256xf32>
    %cst_113 = arith.constant dense<0.000000e+00> : vector<1xf32>
    %285 = vector.multi_reduction <add>, %284, %cst_113 [1, 2] : vector<1x8x256xf32> to vector<1xf32>
    %286 = vector.shape_cast %285 : vector<1xf32> to vector<1x1x1xf32>
    %287 = vector.extract %286[0, 0, 0] : f32 from vector<1x1x1xf32>
    %288 = vector.broadcast %287 : f32 to vector<1x1xf32>
    %cst_114 = arith.constant 1.000000e+00 : f32
    %289 = vector.broadcast %cst_114 : f32 to vector<1x1xf32>
    %290 = arith.maximumf %288, %289 : vector<1x1xf32>
    %291 = vector.shape_cast %283 : vector<8x256xf32> to vector<1x8x256xf32>
    %cst_115 = arith.constant dense<0.000000e+00> : vector<1xf32>
    %292 = vector.multi_reduction <add>, %291, %cst_115 [1, 2] : vector<1x8x256xf32> to vector<1xf32>
    %293 = vector.shape_cast %292 : vector<1xf32> to vector<1x1x1xf32>
    %294 = vector.extract %293[0, 0, 0] : f32 from vector<1x1x1xf32>
    %295 = vector.broadcast %294 : f32 to vector<1x1xf32>
    %cst_116 = arith.constant 1.000000e+00 : f32
    %296 = vector.broadcast %cst_116 : f32 to vector<1x1xf32>
    %297 = arith.maximumf %295, %296 : vector<1x1xf32>
    %298 = math.absf %56 : vector<8x256xf32>
    %299 = arith.mulf %298, %279 : vector<8x256xf32>
    %300 = vector.shape_cast %299 : vector<8x256xf32> to vector<1x8x256xf32>
    %cst_117 = arith.constant dense<0.000000e+00> : vector<1xf32>
    %301 = vector.multi_reduction <add>, %300, %cst_117 [1, 2] : vector<1x8x256xf32> to vector<1xf32>
    %302 = vector.shape_cast %301 : vector<1xf32> to vector<1x1x1xf32>
    %303 = vector.extract %302[0, 0, 0] : f32 from vector<1x1x1xf32>
    %304 = vector.broadcast %303 : f32 to vector<1x1xf32>
    %305 = arith.divf %304, %290 : vector<1x1xf32>
    %cst_118 = arith.constant 1.000000e+00 : f32
    %306 = vector.broadcast %cst_118 : f32 to vector<8x256xf32>
    %307 = arith.subf %306, %56 : vector<8x256xf32>
    %308 = math.absf %307 : vector<8x256xf32>
    %309 = arith.mulf %308, %283 : vector<8x256xf32>
    %310 = vector.shape_cast %309 : vector<8x256xf32> to vector<1x8x256xf32>
    %cst_119 = arith.constant dense<0.000000e+00> : vector<1xf32>
    %311 = vector.multi_reduction <add>, %310, %cst_119 [1, 2] : vector<1x8x256xf32> to vector<1xf32>
    %312 = vector.shape_cast %311 : vector<1xf32> to vector<1x1x1xf32>
    %313 = vector.extract %312[0, 0, 0] : f32 from vector<1x1x1xf32>
    %314 = vector.broadcast %313 : f32 to vector<1x1xf32>
    %315 = arith.divf %314, %297 : vector<1x1xf32>
    %316 = arith.addf %305, %315 : vector<1x1xf32>
    %c0_120 = arith.constant 0 : index
    %c0_121 = arith.constant 0 : index
    %317 = vector.load %arg3[%c0_120, %c0_121] : memref<1x1xf32, #tpu.memory_space<vmem>>, vector<1x1xf32>
    %cst_122 = arith.constant 1.000000e+00 : f32
    %318 = vector.broadcast %cst_122 : f32 to vector<1x1xf32>
    %319 = arith.mulf %318, %219 : vector<1x1xf32>
    %cst_123 = arith.constant 1.000000e+00 : f32
    %320 = vector.broadcast %cst_123 : f32 to vector<1x1xf32>
    %321 = arith.mulf %320, %316 : vector<1x1xf32>
    %322 = arith.addf %319, %321 : vector<1x1xf32>
    %323 = arith.mulf %317, %163 : vector<1x1xf32>
    %324 = arith.addf %148, %323 : vector<1x1xf32>
    %cst_124 = arith.constant 5.000000e-01 : f32
    %325 = vector.broadcast %cst_124 : f32 to vector<1x1xf32>
    %326 = arith.mulf %325, %275 : vector<1x1xf32>
    %327 = arith.subf %324, %326 : vector<1x1xf32>
    %328 = tpu.iota {dimensions = array<i32: 1>} : vector<1x128xi32>
    %cst_125 = arith.constant 0.000000e+00 : f32
    %329 = vector.broadcast %cst_125 : f32 to vector<1x128xf32>
    %c0_i32 = arith.constant 0 : i32
    %330 = vector.broadcast %c0_i32 : i32 to vector<1x128xi32>
    %331 = arith.cmpi eq, %328, %330 : vector<1x128xi32>
    %cst_126 = arith.constant 0.000000e+00 : f32
    %332 = vector.shape_cast %327 : vector<1x1xf32> to vector<1x1xf32>
    %333 = vector.broadcast %332 : vector<1x1xf32> to vector<1x128xf32>
    %334 = vector.broadcast %cst_126 : f32 to vector<1x128xf32>
    %335 = arith.select %331, %333, %334 : vector<1x128xi1>, vector<1x128xf32>
    %336 = arith.addf %329, %335 : vector<1x128xf32>
    %c1_i32 = arith.constant 1 : i32
    %337 = vector.broadcast %c1_i32 : i32 to vector<1x128xi32>
    %338 = arith.cmpi eq, %328, %337 : vector<1x128xi32>
    %cst_127 = arith.constant 0.000000e+00 : f32
    %339 = vector.shape_cast %322 : vector<1x1xf32> to vector<1x1xf32>
    %340 = vector.broadcast %339 : vector<1x1xf32> to vector<1x128xf32>
    %341 = vector.broadcast %cst_127 : f32 to vector<1x128xf32>
    %342 = arith.select %338, %340, %341 : vector<1x128xi1>, vector<1x128xf32>
    %343 = arith.addf %336, %342 : vector<1x128xf32>
    %c2_i32 = arith.constant 2 : i32
    %344 = vector.broadcast %c2_i32 : i32 to vector<1x128xi32>
    %345 = arith.cmpi eq, %328, %344 : vector<1x128xi32>
    %cst_128 = arith.constant 0.000000e+00 : f32
    %346 = vector.shape_cast %275 : vector<1x1xf32> to vector<1x1xf32>
    %347 = vector.broadcast %346 : vector<1x1xf32> to vector<1x128xf32>
    %348 = vector.broadcast %cst_128 : f32 to vector<1x128xf32>
    %349 = arith.select %345, %347, %348 : vector<1x128xi1>, vector<1x128xf32>
    %350 = arith.addf %343, %349 : vector<1x128xf32>
    %c3_i32 = arith.constant 3 : i32
    %351 = vector.broadcast %c3_i32 : i32 to vector<1x128xi32>
    %352 = arith.cmpi eq, %328, %351 : vector<1x128xi32>
    %cst_129 = arith.constant 0.000000e+00 : f32
    %353 = vector.shape_cast %219 : vector<1x1xf32> to vector<1x1xf32>
    %354 = vector.broadcast %353 : vector<1x1xf32> to vector<1x128xf32>
    %355 = vector.broadcast %cst_129 : f32 to vector<1x128xf32>
    %356 = arith.select %352, %354, %355 : vector<1x128xi1>, vector<1x128xf32>
    %357 = arith.addf %350, %356 : vector<1x128xf32>
    %c4_i32 = arith.constant 4 : i32
    %358 = vector.broadcast %c4_i32 : i32 to vector<1x128xi32>
    %359 = arith.cmpi eq, %328, %358 : vector<1x128xi32>
    %cst_130 = arith.constant 0.000000e+00 : f32
    %360 = vector.shape_cast %148 : vector<1x1xf32> to vector<1x1xf32>
    %361 = vector.broadcast %360 : vector<1x1xf32> to vector<1x128xf32>
    %362 = vector.broadcast %cst_130 : f32 to vector<1x128xf32>
    %363 = arith.select %359, %361, %362 : vector<1x128xi1>, vector<1x128xf32>
    %364 = arith.addf %357, %363 : vector<1x128xf32>
    %c5_i32 = arith.constant 5 : i32
    %365 = vector.broadcast %c5_i32 : i32 to vector<1x128xi32>
    %366 = arith.cmpi eq, %328, %365 : vector<1x128xi32>
    %cst_131 = arith.constant 0.000000e+00 : f32
    %367 = vector.shape_cast %163 : vector<1x1xf32> to vector<1x1xf32>
    %368 = vector.broadcast %367 : vector<1x1xf32> to vector<1x128xf32>
    %369 = vector.broadcast %cst_131 : f32 to vector<1x128xf32>
    %370 = arith.select %366, %368, %369 : vector<1x128xi1>, vector<1x128xf32>
    %371 = arith.addf %364, %370 : vector<1x128xf32>
    %c6_i32 = arith.constant 6 : i32
    %372 = vector.broadcast %c6_i32 : i32 to vector<1x128xi32>
    %373 = arith.cmpi eq, %328, %372 : vector<1x128xi32>
    %cst_132 = arith.constant 0.000000e+00 : f32
    %374 = vector.shape_cast %316 : vector<1x1xf32> to vector<1x1xf32>
    %375 = vector.broadcast %374 : vector<1x1xf32> to vector<1x128xf32>
    %376 = vector.broadcast %cst_132 : f32 to vector<1x128xf32>
    %377 = arith.select %373, %375, %376 : vector<1x128xi1>, vector<1x128xf32>
    %378 = arith.addf %371, %377 : vector<1x128xf32>
    %c7_i32 = arith.constant 7 : i32
    %379 = vector.broadcast %c7_i32 : i32 to vector<1x128xi32>
    %380 = arith.cmpi eq, %328, %379 : vector<1x128xi32>
    %cst_133 = arith.constant 0.000000e+00 : f32
    %381 = vector.shape_cast %315 : vector<1x1xf32> to vector<1x1xf32>
    %382 = vector.broadcast %381 : vector<1x1xf32> to vector<1x128xf32>
    %383 = vector.broadcast %cst_133 : f32 to vector<1x128xf32>
    %384 = arith.select %380, %382, %383 : vector<1x128xi1>, vector<1x128xf32>
    %385 = arith.addf %378, %384 : vector<1x128xf32>
    %c8_i32 = arith.constant 8 : i32
    %386 = vector.broadcast %c8_i32 : i32 to vector<1x128xi32>
    %387 = arith.cmpi eq, %328, %386 : vector<1x128xi32>
    %cst_134 = arith.constant 0.000000e+00 : f32
    %388 = vector.shape_cast %305 : vector<1x1xf32> to vector<1x1xf32>
    %389 = vector.broadcast %388 : vector<1x1xf32> to vector<1x128xf32>
    %390 = vector.broadcast %cst_134 : f32 to vector<1x128xf32>
    %391 = arith.select %387, %389, %390 : vector<1x128xi1>, vector<1x128xf32>
    %392 = arith.addf %385, %391 : vector<1x128xf32>
    %c0_135 = arith.constant 0 : index
    %c0_136 = arith.constant 0 : index
    %393 = vector.load %arg20[%c0_135, %c0_136] : memref<1x128xf32, #tpu.memory_space<vmem>>, vector<1x128xf32>
    tpu.vector_store %arg20[%c0_135, %c0_136], %392 {strides = array<i32>} : memref<1x128xf32, #tpu.memory_space<vmem>>, vector<1x128xf32>,
    return
  }
}

</mosaic_0001>

<bundles_post_ra>
// kernel: adv_forward.1
= control target key start
LH: loop header
LB: loop body
LE: loop exit
PB: predicated region body
PF: predicated region fallthrough
CT: control target
= control target key end

     0   :  { %vm216_vm3 = vcmask 523264   ;;  %s2300_s0 = inlined_call_operand.vmem [shape: f32[8,256], index: 0, kind: input, shape index: {}]   ;;  %s2301_s4 = inlined_call_operand.vmem [shape: f32[256,128], index: 4, kind: input, shape index: {}]   ;;  %s2302_s12 = inlined_call_operand.vmem [shape: f32[256,128], index: 12, kind: input, shape index: {}]   ;;  %s2303_s5 = inlined_call_operand.vmem [shape: f32[1,128], index: 5, kind: input, shape index: {}]   ;;  %s2304_s6 = inlined_call_operand.vmem [shape: f32[128,128], index: 6, kind: input, shape index: {}]   ;;  %s2305_s13 = inlined_call_operand.vmem [shape: f32[1,128], index: 13, kind: input, shape index: {}]   ;;  %s2306_s7 = inlined_call_operand.vmem [shape: f32[1,128], index: 7, kind: input, shape index: {}]   ;;  %s2307_s8 = inlined_call_operand.vmem [shape: f32[64,128], index: 8, kind: input, shape index: {}]   ;;  %s2308_s9 = inlined_call_operand.vmem [shape: f32[1,128], index: 9, kind: input, shape index: {}]   ;;  %s2309_s10 = inlined_call_operand.vmem [shape: f32[128,256], index: 10, kind: input, shape index: {}]   ;;  %s2310_s14 = inlined_call_operand.vmem [shape: f32[128,128], index: 14, kind: input, shape index: {}]   ;;  %s2311_s15 = inlined_call_operand.vmem [shape: f32[1,128], index: 15, kind: input, shape index: {}]   ;;  %s2312_s17 = inlined_call_operand.vmem [shape: f32[1,128], index: 17, kind: input, shape index: {}]   ;;  %s2313_s1 = inlined_call_operand.vmem [shape: f32[8,256], index: 1, kind: input, shape index: {}]   ;;  %s2314_s16 = inlined_call_operand.vmem [shape: f32[64,128], index: 16, kind: input, shape index: {}]   ;;  %s2315_s2 = inlined_call_operand.vmem [shape: f32[8,256], index: 2, kind: input, shape index: {}]   ;;  %s2316_s11 = inlined_call_operand.vmem [shape: f32[1,256], index: 11, kind: input, shape index: {}]   ;;  %s2317_s18 = inlined_call_operand.vmem [shape: f32[128,256], index: 18, kind: input, shape index: {}]   ;;  %s2318_s19 = inlined_call_operand.vmem [shape: f32[1,256], index: 19, kind: input, shape index: {}]   ;;  %s2319_s3 = inlined_call_operand.<no memory space> [shape: f32[1,1], index: 3, kind: input, shape index: {}]   ;;  %s2320_s20 = inlined_call_operand.vmem [shape: f32[1,128], index: 20, kind: output, shape index: {}]  }
   0x1   :  { %2325 = sst [smem:[#allocation4_spill]] %s2300_s0 }
   0x2   :  { %2326 = sst [smem:[#allocation5_spill]] %s2301_s4 }
   0x3   :  { %2327 = sst [smem:[#allocation6_spill]] %s2302_s12 }
   0x4   :  { %2328 = sst [smem:[#allocation7_spill]] %s2303_s5 }
   0x5   :  { %2329 = sst [smem:[#allocation8_spill]] %s2304_s6 }
   0x6   :  { %s2330_s23 = sld [smem:[#allocation4_spill]] }
   0x7   :  { %s2331_s26 = sld [smem:[#allocation5_spill]] }
   0x8   :  { %s2332_s29 = sld [smem:[#allocation6_spill]] }
   0x9   :  { %s2333_s24 = sld [smem:[#allocation8_spill]] }
   0xa   :  { %s2334_s12 = sld [smem:[#allocation7_spill]] }
   0xc   :  { %v1584_v0 = vld [vmem:[%s2330_s23] sm:$0xff]  ;;  %v1589_v1 = vld [vmem:[%s2330_s23 + $0x8] sm:$0xff] }
   0xd   :  { %v118_v2 = vld [vmem:[%s2331_s26 + $0xf8] sm:$0xff]  ;;  %v69_v3 = vmul.f32 %v1584_v0, %v1584_v0  ;;  %v70_v4 = vmul.f32 %v1589_v1, %v1589_v1  ;;  %v117_v5 = vld [vmem:[%s2331_s26 + $0xf0] sm:$0xff]  ;;  %v116_v6 = vld [vmem:[%s2331_s26 + $0xe8] sm:$0xff] }
   0xe   :  { %143 = vmatpush.msra.mxu1 %v118_v2  ;;  %v115_v8 = vld [vmem:[%s2331_s26 + $0xe0] sm:$0xff]  ;;  %v102_v9 = vld [vmem:[%s2331_s26 + $0x78] sm:$0xff]  ;;  %v101_v10 = vld [vmem:[%s2331_s26 + $0x70] sm:$0xff] }
   0xf   :  { %v71_v7 = vadd.f32 %v70_v4, %v69_v3  ;;  %v114_v11 = vld [vmem:[%s2331_s26 + $0xd8] sm:$0xff]  ;;  %123 = vmatpush.msra.mxu0 %v102_v9  ;;  %v100_v12 = vld [vmem:[%s2331_s26 + $0x68] sm:$0xff]  ;;  %v113_v13 = vld [vmem:[%s2331_s26 + $0xd0] sm:$0xff] }
  0x10   :  { %144 = vmatpush.msra.mxu1 %v117_v5  ;;  %v99_v14 = vld [vmem:[%s2331_s26 + $0x60] sm:$0xff]  ;;  %v112_v15 = vld [vmem:[%s2331_s26 + $0xc8] sm:$0xff]  ;;  %v98_v16 = vld [vmem:[%s2331_s26 + $0x58] sm:$0xff] }
  0x11   :  { %72 = vadd.xlane.f32.xlu0 %v71_v7  ;;  %124 = vmatpush.msra.mxu0 %v101_v10  ;;  %v111_v17 = vld [vmem:[%s2331_s26 + $0xc0] sm:$0xff]  ;;  %v110_v18 = vld [vmem:[%s2331_s26 + $0xb8] sm:$0xff]  ;;  %v109_v19 = vld [vmem:[%s2331_s26 + $0xb0] sm:$0xff] }
  0x12   :  { %145 = vmatpush.msra.mxu1 %v116_v6  ;;  %v108_v20 = vld [vmem:[%s2331_s26 + $0xa8] sm:$0xff]  ;;  %v107_v21 = vld [vmem:[%s2331_s26 + $0xa0] sm:$0xff]  ;;  %v106_v22 = vld [vmem:[%s2331_s26 + $0x98] sm:$0xff] }
  0x13   :  { %125 = vmatpush.msra.mxu0 %v100_v12  ;;  %v105_v23 = vld [vmem:[%s2331_s26 + $0x90] sm:$0xff]  ;;  %v104_v24 = vld [vmem:[%s2331_s26 + $0x88] sm:$0xff]  ;;  %v103_v25 = vld [vmem:[%s2331_s26 + $0x80] sm:$0xff] }
  0x14   :  { %146 = vmatpush.msra.mxu1 %v115_v8  ;;  %v516_v26 = vld [vmem:[%s2332_s29 + $0x78] sm:$0xff]  ;;  %v97_v27 = vld [vmem:[%s2331_s26 + $0x50] sm:$0xff]  ;;  %v96_v29 = vld [vmem:[%s2331_s26 + $0x48] sm:$0xff] }
  0x15   :  { %126 = vmatpush.msra.mxu0 %v99_v14  ;;  %v515_v28 = vld [vmem:[%s2332_s29 + $0x70] sm:$0xff]  ;;  %v514_v30 = vld [vmem:[%s2332_s29 + $0x68] sm:$0xff]  ;;  %v95_v31 = vld [vmem:[%s2331_s26 + $0x40] sm:$0xff] }
  0x16   :  { %147 = vmatpush.msra.mxu1 %v114_v11  ;;  %v513_v32 = vld [vmem:[%s2332_s29 + $0x60] sm:$0xff]  ;;  %v94_v33 = vld [vmem:[%s2331_s26 + $0x38] sm:$0xff]  ;;  %v93_v35 = vld [vmem:[%s2331_s26 + $0x30] sm:$0xff] }
  0x17   :  { %127 = vmatpush.msra.mxu0 %v98_v16  ;;  %v512_v34 = vld [vmem:[%s2332_s29 + $0x58] sm:$0xff]  ;;  %v511_v36 = vld [vmem:[%s2332_s29 + $0x50] sm:$0xff]  ;;  %v92_v37 = vld [vmem:[%s2331_s26 + $0x28] sm:$0xff] }
  0x18   :  { %148 = vmatpush.msra.mxu1 %v113_v13  ;;  %v510_v38 = vld [vmem:[%s2332_s29 + $0x48] sm:$0xff]  ;;  %v91_v39 = vld [vmem:[%s2331_s26 + $0x20] sm:$0xff]  ;;  %v90_v41 = vld [vmem:[%s2331_s26 + $0x18] sm:$0xff] }
  0x19   :  { %128 = vmatpush.msra.mxu0 %v97_v27  ;;  %v509_v40 = vld [vmem:[%s2332_s29 + $0x40] sm:$0xff]  ;;  %v508_v42 = vld [vmem:[%s2332_s29 + $0x38] sm:$0xff]  ;;  %v89_v43 = vld [vmem:[%s2331_s26 + $0x10] sm:$0xff] }
  0x1a   :  { %149 = vmatpush.msra.mxu1 %v112_v15  ;;  %v507_v44 = vld [vmem:[%s2332_s29 + $0x30] sm:$0xff]  ;;  %v88_v45 = vld [vmem:[%s2331_s26 + $0x8] sm:$0xff]  ;;  %v87_v47 = vld [vmem:[%s2331_s26] sm:$0xff] }
  0x1b   :  { %129 = vmatpush.msra.mxu0 %v96_v29  ;;  %v506_v46 = vld [vmem:[%s2332_s29 + $0x28] sm:$0xff]  ;;  %v505_v48 = vld [vmem:[%s2332_s29 + $0x20] sm:$0xff]  ;;  %v504_v49 = vld [vmem:[%s2332_s29 + $0x18] sm:$0xff] }
  0x1c   :  { %150 = vmatpush.msra.mxu1 %v111_v17  ;;  %v503_v50 = vld [vmem:[%s2332_s29 + $0x10] sm:$0xff]  ;;  %v502_v51 = vld [vmem:[%s2332_s29 + $0x8] sm:$0xff]  ;;  %v501_v52 = vld [vmem:[%s2332_s29] sm:$0xff] }
  0x1d   :  { %130 = vmatpush.msra.mxu0 %v95_v31  ;;  %v179_v53 = vld [vmem:[%s2333_s24 + $0x78] sm:$0xff]  ;;  %v178_v54 = vld [vmem:[%s2333_s24 + $0x70] sm:$0xff]  ;;  %v177_v57 = vld [vmem:[%s2333_s24 + $0x68] sm:$0xff] }
  0x1e   :  { %151 = vmatpush.msra.mxu1 %v110_v18  ;;  %184 = vmatpush.msra.mxu2 %v179_v53  ;;  %v176_v58 = vld [vmem:[%s2333_s24 + $0x60] sm:$0xff]  ;;  %v175_v59 = vld [vmem:[%s2333_s24 + $0x58] sm:$0xff]  ;;  %v174_v60 = vld [vmem:[%s2333_s24 + $0x50] sm:$0xff] }
  0x1f   :  { %131 = vmatpush.msra.mxu0 %v94_v33  ;;  %v173_v62 = vld [vmem:[%s2333_s24 + $0x48] sm:$0xff]  ;;  %v172_v2 = vld [vmem:[%s2333_s24 + $0x40] sm:$0xff]  ;;  %v171_v4 = vld [vmem:[%s2333_s24 + $0x38] sm:$0xff] }
  0x20   :  { %152 = vmatpush.msra.mxu1 %v109_v19  ;;  %185 = vmatpush.msra.mxu2 %v178_v54  ;;  %v170_v6 = vld [vmem:[%s2333_s24 + $0x30] sm:$0xff]  ;;  %v169_v8 = vld [vmem:[%s2333_s24 + $0x28] sm:$0xff]  ;;  %v168_v10 = vld [vmem:[%s2333_s24 + $0x20] sm:$0xff] }
  0x21   :  { %132 = vmatpush.msra.mxu0 %v93_v35  ;;  %v167_v14 = vld [vmem:[%s2333_s24 + $0x18] sm:$0xff]  ;;  %v166_v15 = vld [vmem:[%s2333_s24 + $0x10] sm:$0xff]  ;;  %v165_v16 = vld [vmem:[%s2333_s24 + $0x8] sm:$0xff] }
  0x22   :  { %153 = vmatpush.msra.mxu1 %v108_v20  ;;  %186 = vmatpush.msra.mxu2 %v177_v57  ;;  %v164_v17 = vld [vmem:[%s2333_s24] sm:$0xff]  ;;  %v532_v18 = vld [vmem:[%s2332_s29 + $0xf8] sm:$0xff]  ;;  %v531_v19 = vld [vmem:[%s2332_s29 + $0xf0] sm:$0xff] }
  0x23   :  { %133 = vmatpush.msra.mxu0 %v92_v37  ;;  %v530_v20 = vld [vmem:[%s2332_s29 + $0xe8] sm:$0xff]  ;;  %v523_v27 = vld [vmem:[%s2332_s29 + $0xb0] sm:$0xff]  ;;  %v521_v29 = vld [vmem:[%s2332_s29 + $0xa0] sm:$0xff] }
  0x24   :  { %154 = vmatpush.msra.mxu1 %v107_v21  ;;  %187 = vmatpush.msra.mxu2 %v176_v58  ;;  %v529_v21 = vld [vmem:[%s2332_s29 + $0xe0] sm:$0xff]  ;;  %v519_v31 = vld [vmem:[%s2332_s29 + $0x90] sm:$0xff]  ;;  %v270_v53 = vld [vmem:[%s2309_s10 + $0xe8] sm:$0xff] }
  0x25   :  { %134 = vmatpush.msra.mxu0 %v91_v39  ;;  %v517_v33 = vld [vmem:[%s2332_s29 + $0x80] sm:$0xff]  ;;  %v210_v35 = vld [vmem:[%s2307_s8 + $0x30] sm:$0xff]  ;;  %v266_v57 = vld [vmem:[%s2309_s10 + $0xc8] sm:$0xff] }
  0x26   :  { %155 = vmatpush.msra.mxu1 %v106_v22  ;;  %188 = vmatpush.msra.mxu2 %v175_v59  ;;  %v528_v22 = vld [vmem:[%s2332_s29 + $0xd8] sm:$0xff]  ;;  %v208_v37 = vld [vmem:[%s2307_s8 + $0x20] sm:$0xff]  ;;  %v206_v39 = vld [vmem:[%s2307_s8 + $0x10] sm:$0xff] }
  0x27   :  { %135 = vmatpush.msra.mxu0 %v90_v41  ;;  %v263_v54 = vld [vmem:[%s2309_s10 + $0xb0] sm:$0xff]  ;;  %v264_v59 = vld [vmem:[%s2309_s10 + $0xb8] sm:$0xff] }
  0x28   :  { %156 = vmatpush.msra.mxu1 %v105_v23  ;;  %189 = vmatpush.msra.mxu2 %v174_v60  ;;  %v527_v23 = vld [vmem:[%s2332_s29 + $0xd0] sm:$0xff]  ;;  %v257_v60 = vld [vmem:[%s2309_s10 + $0x80] sm:$0xff] }
  0x29   :  { %136 = vmatpush.msra.mxu0 %v89_v43  ;;  %v259_v58 = vld [vmem:[%s2309_s10 + $0x90] sm:$0xff] }
  0x2a   :  { %157 = vmatpush.msra.mxu1 %v104_v24  ;;  %190 = vmatpush.msra.mxu2 %v173_v62  ;;  %v526_v24 = vld [vmem:[%s2332_s29 + $0xc8] sm:$0xff]  ;;  %v255_v62 = vld [vmem:[%s2309_s10 + $0x70] sm:$0xff] }
  0x2b   :  { %137 = vmatpush.msra.mxu0 %v88_v45 }
  0x2c   :  { %158 = vmatpush.msra.mxu1 %v103_v25  ;;  %191 = vmatpush.msra.mxu2 %v172_v2  ;;  %v525_v25 = vld [vmem:[%s2332_s29 + $0xc0] sm:$0xff] }
  0x2d   :  { %138 = vmatpush.msra.mxu0 %v87_v47  ;;  %v204_v47 = vld [vmem:[%s2307_s8] sm:$0xff] }
  0x2e   :  { %537 = vmatpush.msrb.mxu1 %v516_v26  ;;  %192 = vmatpush.msra.mxu2 %v171_v4  ;;  %v524_v26 = vld [vmem:[%s2332_s29 + $0xb8] sm:$0xff]  ;;  %v253_v2 = vld [vmem:[%s2309_s10 + $0x60] sm:$0xff] }
  0x2f   :  { %v1369_v4 = vld [vmem:[%s2306_s7] ss:$0 sm:$0xff] }
  0x30   :  { %538 = vmatpush.msrb.mxu1 %v515_v28  ;;  %193 = vmatpush.msra.mxu2 %v170_v6  ;;  %v522_v28 = vld [vmem:[%s2332_s29 + $0xa8] sm:$0xff]  ;;  %v256_v6 = vld [vmem:[%s2309_s10 + $0x78] sm:$0xff] }
  0x32   :  { %539 = vmatpush.msrb.mxu1 %v514_v30  ;;  %194 = vmatpush.msra.mxu2 %v169_v8  ;;  %v520_v30 = vld [vmem:[%s2332_s29 + $0x98] sm:$0xff]  ;;  %v254_v8 = vld [vmem:[%s2309_s10 + $0x68] sm:$0xff] }
  0x34   :  { %540 = vmatpush.msrb.mxu1 %v513_v32  ;;  %195 = vmatpush.msra.mxu2 %v168_v10  ;;  %v518_v32 = vld [vmem:[%s2332_s29 + $0x88] sm:$0xff] }
  0x36   :  { %541 = vmatpush.msrb.mxu1 %v512_v34  ;;  %196 = vmatpush.msra.mxu2 %v167_v14  ;;  %v211_v34 = vld [vmem:[%s2307_s8 + $0x38] sm:$0xff]  ;;  %v243_v14 = vld [vmem:[%s2309_s10 + $0x10] sm:$0xff] }
  0x37   :  { %228 = vmatpush.msra.mxu3 %v211_v34  ;;  %v594_v34 = vld [vmem:[%s2310_s14 + $0x10] sm:$0xff] }
  0x38   :  { %542 = vmatpush.msrb.mxu1 %v511_v36  ;;  %197 = vmatpush.msra.mxu2 %v166_v15  ;;  %v209_v36 = vld [vmem:[%s2307_s8 + $0x28] sm:$0xff]  ;;  %v241_v15 = vld [vmem:[%s2309_s10] sm:$0xff] }
  0x39   :  { %229 = vmatpush.msra.mxu3 %v210_v35  ;;  %v593_v35 = vld [vmem:[%s2310_s14 + $0x8] sm:$0xff] }
  0x3a   :  { %543 = vmatpush.msrb.mxu1 %v510_v38  ;;  %198 = vmatpush.msra.mxu2 %v165_v16  ;;  %v207_v38 = vld [vmem:[%s2307_s8 + $0x18] sm:$0xff] }
  0x3b   :  { %230 = vmatpush.msra.mxu3 %v209_v36  ;;  %v607_v16 = vld [vmem:[%s2310_s14 + $0x78] sm:$0xff]  ;;  %v592_v36 = vld [vmem:[%s2310_s14] sm:$0xff] }
  0x3c   :  { %544 = vmatpush.msrb.mxu1 %v509_v40  ;;  %199 = vmatpush.msra.mxu2 %v164_v17  ;;  %v1367_v40 = vld [vmem:[%s2334_s12] ss:$0 sm:$0xff]  ;;  %v606_v17 = vld [vmem:[%s2310_s14 + $0x70] sm:$0xff] }
  0x3d   :  { %231 = vmatpush.msra.mxu3 %v208_v37  ;;  %v1370_v37 = vld [vmem:[%s2308_s9] ss:$0 sm:$0xff] }
  0x3e   :  { %545 = vmatpush.msrb.mxu1 %v508_v42  ;;  %563 = vmatpush.msrb.mxu2 %v532_v18  ;;  %v605_v18 = vld [vmem:[%s2310_s14 + $0x68] sm:$0xff] }
  0x3f   :  { %232 = vmatpush.msra.mxu3 %v207_v38 }
  0x40   :  { %546 = vmatpush.msrb.mxu1 %v507_v44  ;;  %564 = vmatpush.msrb.mxu2 %v531_v19  ;;  %v604_v19 = vld [vmem:[%s2310_s14 + $0x60] sm:$0xff] }
  0x41   :  { %233 = vmatpush.msra.mxu3 %v206_v39  ;;  %v2022_v39 = vld [vmem:[%s2305_s13] ss:$0 sm:$0xff] }
  0x42   :  { %547 = vmatpush.msrb.mxu1 %v506_v46  ;;  %565 = vmatpush.msrb.mxu2 %v530_v20  ;;  %v205_v46 = vld [vmem:[%s2307_s8 + $0x8] sm:$0xff]  ;;  %v603_v20 = vld [vmem:[%s2310_s14 + $0x58] sm:$0xff] }
  0x43   :  { %234 = vmatpush.msra.mxu3 %v205_v46 }
  0x44   :  { %548 = vmatpush.msrb.mxu1 %v505_v48  ;;  %566 = vmatpush.msrb.mxu2 %v529_v21  ;;  %v271_v48 = vld [vmem:[%s2309_s10 + $0xf0] sm:$0xff] }
  0x45   :  { %235 = vmatpush.msra.mxu3 %v204_v47  ;;  %v602_v21 = vld [vmem:[%s2310_s14 + $0x50] sm:$0xff]  ;;  %v320_v47 = vld [vmem:[%s2313_s1 + $0x8] sm:$0xff] }
  0x46   :  { %549 = vmatpush.msrb.mxu1 %v504_v49  ;;  %567 = vmatpush.msrb.mxu2 %v528_v22  ;;  %v269_v49 = vld [vmem:[%s2309_s10 + $0xe0] sm:$0xff]  ;;  %v601_v22 = vld [vmem:[%s2310_s14 + $0x48] sm:$0xff] }
  0x47   :  { %279 = vmatpush.msrb.mxu3 %v271_v48  ;;  %v645_v48 = vld [vmem:[%s2314_s16 + $0x38] sm:$0xff] }
  0x48   :  { %550 = vmatpush.msrb.mxu1 %v503_v50  ;;  %568 = vmatpush.msrb.mxu2 %v527_v23  ;;  %v267_v50 = vld [vmem:[%s2309_s10 + $0xd0] sm:$0xff]  ;;  %v250_v23 = vld [vmem:[%s2309_s10 + $0x48] sm:$0xff] }
  0x49   :  { %280 = vmatpush.msrb.mxu3 %v269_v49  ;;  %v388_v49 = vld [vmem:[%s2315_s2 + $0x8] sm:$0xff] }
  0x4a   :  { %551 = vmatpush.msrb.mxu1 %v502_v51  ;;  %569 = vmatpush.msrb.mxu2 %v526_v24  ;;  %v265_v51 = vld [vmem:[%s2309_s10 + $0xc0] sm:$0xff] }
  0x4b   :  { %281 = vmatpush.msrb.mxu3 %v267_v50  ;;  %v600_v24 = vld [vmem:[%s2310_s14 + $0x40] sm:$0xff]  ;;  %v322_v50 = vmul.f32 -0.9998, %v320_v47 }
  0x4c   :  { %552 = vmatpush.msrb.mxu1 %v501_v52  ;;  %570 = vmatpush.msrb.mxu2 %v525_v25  ;;  %v272_v52 = vld [vmem:[%s2309_s10 + $0xf8] sm:$0xff] }
  0x4d   :  { %299 = vmatpush.msrb.mxu0 %v272_v52  ;;  %282 = vmatpush.msrb.mxu3 %v265_v51  ;;  %v248_v25 = vld [vmem:[%s2309_s10 + $0x38] sm:$0xff]  ;;  %v644_v51 = vld [vmem:[%s2314_s16 + $0x30] sm:$0xff]  ;;  %v390_v52 = vmul.f32 -0.9998, %v388_v49 }
  0x4e   :  { %571 = vmatpush.msrb.mxu2 %v524_v26  ;;  %v599_v26 = vld [vmem:[%s2310_s14 + $0x38] sm:$0xff] }
  0x4f   :  { %300 = vmatpush.msrb.mxu0 %v270_v53  ;;  %283 = vmatpush.msrb.mxu3 %v263_v54  ;;  %v643_v53 = vld [vmem:[%s2314_s16 + $0x28] sm:$0xff]  ;;  %v319_v54 = vld [vmem:[%s2313_s1] sm:$0xff] }
  0x50   :  { %572 = vmatpush.msrb.mxu2 %v523_v27  ;;  %v246_v27 = vld [vmem:[%s2309_s10 + $0x28] sm:$0xff] }
  0x52   :  { %573 = vmatpush.msrb.mxu2 %v522_v28  ;;  %v598_v28 = vld [vmem:[%s2310_s14 + $0x30] sm:$0xff] }
  0x54   :  { %574 = vmatpush.msrb.mxu2 %v521_v29  ;;  %v244_v29 = vld [vmem:[%s2309_s10 + $0x18] sm:$0xff] }
  0x56   :  { %575 = vmatpush.msrb.mxu2 %v520_v30  ;;  %v597_v30 = vld [vmem:[%s2310_s14 + $0x28] sm:$0xff] }
  0x58   :  { %576 = vmatpush.msrb.mxu2 %v519_v31  ;;  %v242_v31 = vld [vmem:[%s2309_s10 + $0x8] sm:$0xff] }
  0x5a   :  { %577 = vmatpush.msrb.mxu2 %v518_v32  ;;  %v596_v32 = vld [vmem:[%s2310_s14 + $0x20] sm:$0xff] }
  0x5c   :  { %578 = vmatpush.msrb.mxu2 %v517_v33  ;;  %v595_v33 = vld [vmem:[%s2310_s14 + $0x18] sm:$0xff] }
  0x84   :  { %v73_v55 = vpop.xlane.xlu0 %72 }
  0x85   :  { %v74_v56 = vadd.f32 1e-12, %v73_v55  ;;  %v268_v55 = vld [vmem:[%s2309_s10 + $0xd8] sm:$0xff] }
  0x86   :  { %301 = vmatpush.msrb.mxu0 %v268_v55  ;;  %v324_v55 = vadd.f32 0.9999, %v322_v50 }
  0x87   :  { %1373 = vrsqrt.f32 %v74_v56  ;;  %vm81_vm1 = vweird.f32 %v74_v56 }
  0x88   :  { %302 = vmatpush.msrb.mxu0 %v266_v57  ;;  %v387_v57 = vld [vmem:[%s2315_s2] sm:$0xff] }
  0x8a   :  { %303 = vmatpush.msrb.mxu0 %v264_v59  ;;  %v321_v59 = vmul.f32 -0.9998, %v319_v54 }
  0x8d   :  { %v1374_v61 = vpop.eup %1373 }
  0x8e   :  { %v76_v63 = vmul.f32 %v1374_v61, %v74_v56  ;;  %vm82_vm0 = vweird.f32 %v1374_v61  ;;  %v261_v56 = vld [vmem:[%s2309_s10 + $0xa0] sm:$0xff] }
  0x8f   :  { %vm83_vm2 = vmor %vm81_vm1, %vm82_vm0  ;;  %284 = vmatpush.msrb.mxu3 %v261_v56  ;;  %v642_v56 = vld [vmem:[%s2314_s16 + $0x20] sm:$0xff] }
  0x90   :  { %v77_v3 = vmul.f32 %v1374_v61, %v76_v63  ;;  %v260_v63 = vld [vmem:[%s2309_s10 + $0x98] sm:$0xff] }
  0x91   :  { %285 = vmatpush.msrb.mxu3 %v259_v58  ;;  %v392_v58 = vadd.f32 0.9999, %v390_v52 }
  0x92   :  { %v78_v5 = vmul.f32 0.5, %v77_v3  ;;  %v258_v3 = vld [vmem:[%s2309_s10 + $0x88] sm:$0xff] }
  0x93   :  { %286 = vmatpush.msrb.mxu3 %v257_v60  ;;  %v641_v60 = vld [vmem:[%s2314_s16 + $0x18] sm:$0xff] }
  0x94   :  { %v79_v7 = vsub.f32 1.5, %v78_v5  ;;  %v251_v5 = vld [vmem:[%s2309_s10 + $0x50] sm:$0xff] }
  0x95   :  { %287 = vmatpush.msrb.mxu3 %v255_v62  ;;  %v389_v62 = vmul.f32 -0.9998, %v387_v57 }
  0x96   :  { %v80_v9 = vmul.f32 %v1374_v61, %v79_v7  ;;  %v249_v7 = vld [vmem:[%s2309_s10 + $0x40] sm:$0xff] }
  0x97   :  { %288 = vmatpush.msrb.mxu3 %v253_v2  ;;  %v398_v2 = vsub.f32 1.0, %v392_v58 }
  0x98   :  { %v84_v11 = vsel %vm83_vm2, %v1374_v61, %v80_v9  ;;  %v262_v61 = vld [vmem:[%s2309_s10 + $0xa8] sm:$0xff] }
  0x99   :  { %v85_v12 = vmul.f32 %v84_v11, %v1584_v0  ;;  %v1777_v13 = vmul.f32 %v84_v11, %v1589_v1  ;;  %304 = vmatpush.msrb.mxu0 %v262_v61  ;;  %289 = vmatpush.msrb.mxu3 %v251_v5  ;;  %v247_v11 = vld [vmem:[%s2309_s10 + $0x30] sm:$0xff]  ;;  %v330_v61 = vsub.f32 1.0, %v324_v55  ;;  %v391_v5 = vadd.f32 0.9999, %v389_v62 }
  0x9b   :  { %139 = vmatmul.f32.vlgmr.msra.gmra.mxu0 %v85_v12  ;;  %159 = vmatmul.f32.vlgmr.msra.gmra.mxu1 %v1777_v13 }
  0x9c   :  { %305 = vmatpush.msrb.mxu0 %v260_v63  ;;  %290 = vmatpush.msrb.mxu3 %v249_v7  ;;  %v640_v63 = vld [vmem:[%s2314_s16 + $0x10] sm:$0xff] }
  0x9e   :  { %306 = vmatpush.msrb.mxu0 %v258_v3  ;;  %291 = vmatpush.msrb.mxu3 %v247_v11  ;;  %v323_v3 = vadd.f32 0.9999, %v321_v59 }
  0xa0   :  { %307 = vmatpush.msrb.mxu0 %v256_v6  ;;  %v638_v6 = vld [vmem:[%s2314_s16] sm:$0xff]  ;;  %v329_v7 = vsub.f32 1.0, %v323_v3 }
  0xa2   :  { %308 = vmatpush.msrb.mxu0 %v254_v8  ;;  %v397_v8 = vsub.f32 1.0, %v391_v5 }
  0xa3   :  { %553 = vmatmul.f32.vlgmr.msrb.gmra.mxu1 %v85_v12  ;;  %v252_v12 = vld [vmem:[%s2309_s10 + $0x58] sm:$0xff] }
  0xa4   :  { %309 = vmatpush.msrb.mxu0 %v252_v12 }
  0xa6   :  { %310 = vmatpush.msrb.mxu0 %v250_v23 }
  0xa8   :  { %311 = vmatpush.msrb.mxu0 %v248_v25 }
  0xaa   :  { %312 = vmatpush.msrb.mxu0 %v246_v27 }
  0xac   :  { %313 = vmatpush.msrb.mxu0 %v244_v29 }
  0xae   :  { %314 = vmatpush.msrb.mxu0 %v242_v31 }
  0xb0   :  { %661 = vmatpush.msra.mxu0 %v645_v48 }
  0xb2   :  { %662 = vmatpush.msra.mxu0 %v644_v51 }
  0xb4   :  { %663 = vmatpush.msra.mxu0 %v643_v53 }
  0xb6   :  { %664 = vmatpush.msra.mxu0 %v642_v56 }
  0xb8   :  { %665 = vmatpush.msra.mxu0 %v641_v60 }
  0xba   :  { %666 = vmatpush.msra.mxu0 %v640_v63 }
 0x118   :  { %v140_v41 = vpop.f32.mrf.mxu0  ;;  %v160_v43 = vpop.f32.mrf.mxu1 }
 0x119   :  { %v141_v42 = vadd.f32 %v1367_v40, %v140_v41 }
 0x11b   :  { %v161_v44 = vadd.f32 %v160_v43, %v141_v42 }
 0x11d   :  { %1375 = vtanh.f32 %v161_v44 }
 0x120   :  { %v554_v41 = vpop.f32.mrf.mxu1 }
 0x121   :  { %v555_v43 = vadd.f32 %v2022_v39, %v554_v41 }
 0x123   :  { %v1376_v45 = vpop.eup %1375 }
 0x124   :  { %200 = vmatmul.f32.vlgmr.msra.gmra.mxu2 %v1376_v45 }
 0x12c   :  { %579 = vmatmul.f32.vlgmr.msrb.gmra.mxu2 %v1777_v13  ;;  %v245_v13 = vld [vmem:[%s2309_s10 + $0x20] sm:$0xff] }
 0x12d   :  { %292 = vmatpush.msrb.mxu3 %v245_v13  ;;  %v273_v13 = vld [vmem:[%s2316_s11] sm:$0x3] }
 0x12f   :  { %293 = vmatpush.msrb.mxu3 %v243_v14 }
 0x131   :  { %294 = vmatpush.msrb.mxu3 %v241_v15 }
 0x1a7   :  { %v201_v9 = vpop.f32.mrf.mxu2 }
 0x1a8   :  { %v202_v10 = vadd.f32 %v1369_v4, %v201_v9  ;;  %v639_v4 = vld [vmem:[%s2314_s16 + $0x8] sm:$0xff] }
 0x1a9   :  { %667 = vmatpush.msra.mxu0 %v639_v4 }
 0x1aa   :  { %1321 = vmatmul.msk.f32.vlgmr.msra.gmra.mxu3 %vm216_vm3, %v202_v10 }
 0x1ab   :  { %612 = vmatpush.msra.mxu3 %v607_v16  ;;  %668 = vmatpush.msra.mxu0 %v638_v6 }
 0x1ad   :  { %613 = vmatpush.msra.mxu3 %v606_v17 }
 0x1af   :  { %614 = vmatpush.msra.mxu3 %v605_v18  ;;  %v580_v42 = vpop.f32.mrf.mxu2 }
 0x1b0   :  { %v581_v44 = vadd.f32 %v580_v42, %v555_v43 }
 0x1b1   :  { %615 = vmatpush.msra.mxu3 %v604_v19 }
 0x1b3   :  { %616 = vmatpush.msra.mxu3 %v603_v20 }
 0x1b5   :  { %617 = vmatpush.msra.mxu3 %v602_v21  ;;  %v276_v21 = vperm.slane %v273_v13, 1 }
 0x1b7   :  { %618 = vmatpush.msra.mxu3 %v601_v22 }
 0x1b9   :  { %619 = vmatpush.msra.mxu3 %v600_v24 }
 0x1bb   :  { %620 = vmatpush.msra.mxu3 %v599_v26 }
 0x1bd   :  { %621 = vmatpush.msra.mxu3 %v598_v28 }
 0x1bf   :  { %622 = vmatpush.msra.mxu3 %v597_v30 }
 0x1c1   :  { %623 = vmatpush.msra.mxu3 %v596_v32 }
 0x1c3   :  { %624 = vmatpush.msra.mxu3 %v595_v33  ;;  %v275_v33 = vperm.slane %v273_v13, 0 }
 0x1c5   :  { %625 = vmatpush.msra.mxu3 %v594_v34 }
 0x1c7   :  { %626 = vmatpush.msra.mxu3 %v593_v35 }
 0x1c9   :  { %627 = vmatpush.msra.mxu3 %v592_v36 }
 0x22d   :  { %v237_v38 = vpop.f32.mrf.mxu3 }
 0x22e   :  { %v238_v40 = vadd.f32 %v1370_v37, %v237_v38 }
 0x230   :  { %1377 = vtanh.f32 %v238_v40 }
 0x231   :  { %1379 = vtanh.f32 %v581_v44 }
 0x232   :  { %1381 = vlog2.f32 %v324_v55 }
 0x233   :  { %1383 = vlog2.f32 %v330_v61 }
 0x234   :  { %1385 = vlog2.f32 %v392_v58 }
 0x235   :  { %1387 = vlog2.f32 %v398_v2 }
 0x236   :  { %v1378_v45 = vpop.eup %1377  ;;  %1389 = vlog2.f32 %v323_v3 }
 0x237   :  { %295 = vmatmul.f32.vlgmr.msrb.gmra.mxu3 %v1378_v45  ;;  %315 = vmatmul.f32.vlgmr.msrb.gmra.mxu0 %v1378_v45  ;;  %v1380_v46 = vpop.eup %1379  ;;  %1391 = vlog2.f32 %v329_v7  ;;  %v2067_v45 = vld [vmem:[%s2311_s15] ss:$0 sm:$0xff] }
 0x238   :  { %v1382_v9 = vpop.eup %1381  ;;  %1393 = vlog2.f32 %v391_v5  ;;  %v380_v5 = vsub.f32 1.0, %v1589_v1 }
 0x239   :  { %v1384_v10 = vpop.eup %1383  ;;  %1395 = vlog2.f32 %v397_v8  ;;  %v328_v14 = vmul.f32 0.6931472, %v1382_v9 }
 0x23a   :  { %v1386_v11 = vpop.eup %1385  ;;  %v334_v16 = vmul.f32 0.6931472, %v1384_v10 }
 0x23b   :  { %v1388_v12 = vpop.eup %1387  ;;  %v396_v17 = vmul.f32 0.6931472, %v1386_v11 }
 0x23c   :  { %v1390_v15 = vpop.eup %1389  ;;  %v402_v18 = vmul.f32 0.6931472, %v1388_v12  ;;  %v336_v23 = vsub.f32 %v328_v14, %v334_v16 }
 0x23d   :  { %v1392_v19 = vpop.eup %1391  ;;  %v326_v26 = vmul.f32 0.6931472, %v1390_v15 }
 0x23e   :  { %v1394_v20 = vpop.eup %1393  ;;  %v404_v24 = vsub.f32 %v396_v17, %v402_v18  ;;  %v332_v28 = vmul.f32 0.6931472, %v1392_v19 }
 0x23f   :  { %628 = vmatmul.f32.vlgmr.msra.gmra.mxu3 %v1380_v46  ;;  %v1396_v22 = vpop.eup %1395  ;;  %v394_v29 = vmul.f32 0.6931472, %v1394_v20 }
 0x240   :  { %v400_v30 = vmul.f32 0.6931472, %v1396_v22  ;;  %v335_v36 = vsub.f32 %v326_v26, %v332_v28 }
 0x242   :  { %v403_v37 = vsub.f32 %v394_v29, %v400_v30  ;;  %v379_v30 = vsub.f32 1.0, %v1584_v0 }
 0x2b4   :  { %v316_v25 = vpop.f32.mrf.mxu0 }
 0x2b5   :  { %v317_v27 = vadd.f32 %v316_v25, %v276_v21 }
 0x2b7   :  { %v338_v31 = vadd.f32 %v336_v23, %v317_v27  ;;  %v406_v32 = vadd.f32 %v404_v24, %v317_v27 }
 0x2b9   :  { %v1323_v34 = vmul.f32 -1.442695, %v338_v31  ;;  %v1325_v35 = vmul.f32 -1.442695, %v406_v32 }
 0x2ba   :  { %v296_v38 = vpop.f32.mrf.mxu3 }
 0x2bb   :  { %1397 = vpow2.f32 %v1323_v34  ;;  %v297_v40 = vadd.f32 %v296_v38, %v275_v33 }
 0x2bc   :  { %1399 = vpow2.f32 %v1325_v35 }
 0x2bd   :  { %v337_v41 = vadd.f32 %v335_v36, %v297_v40  ;;  %v405_v42 = vadd.f32 %v403_v37, %v297_v40 }
 0x2bf   :  { %v1322_v43 = vmul.f32 -1.442695, %v337_v41  ;;  %v1324_v44 = vmul.f32 -1.442695, %v405_v42 }
 0x2c1   :  { %v1398_v46 = vpop.eup %1397  ;;  %1401 = vpow2.f32 %v1322_v43 }
 0x2c2   :  { %v1400_v47 = vpop.eup %1399  ;;  %v346_v48 = vadd.f32 1.0, %v1398_v46  ;;  %1403 = vpow2.f32 %v1324_v44  ;;  %v629_v49 = vpop.f32.mrf.mxu3 }
 0x2c3   :  { %v414_v50 = vadd.f32 1.0, %v1400_v47  ;;  %v2070_v51 = vadd.f32 %v2067_v45, %v629_v49 }
 0x2c4   :  { %1405 = vrcp.f32 %v346_v48  ;;  %v373_v61 = vand.u32 2147483648, %v346_v48  ;;  %v371_v62 = vand.u32 2147483647, %v346_v48  ;;  %vm367_vm5 = vweird.f32 %v346_v48 }
 0x2c5   :  { %1407 = vrcp.f32 %v414_v50  ;;  %1326 = vmatmul.msk.f32.vlgmr.msra.gmra.mxu0 %vm216_vm3, %v2070_v51  ;;  %v439_v2 = vand.u32 2147483647, %v414_v50  ;;  %v441_v3 = vand.u32 2147483648, %v414_v50  ;;  %vm435_vm6 = vweird.f32 %v414_v50 }
 0x2c6   :  { %vm372_vm8 = vcmp.eq.f32.partialorder %v371_v62, 8.507059e+37  ;;  %v374_v11 = vor.u32 1.1754944e-38, %v373_v61  ;;  %v702_v61 = vld [vmem:[%s2317_s18 + $0xe0] sm:$0xff]  ;;  %v703_v62 = vld [vmem:[%s2317_s18 + $0xe8] sm:$0xff] }
 0x2c7   :  { %v1402_v52 = vpop.eup %1401  ;;  %vm440_vm10 = vcmp.eq.f32.partialorder %v439_v2, 8.507059e+37  ;;  %v442_v14 = vor.u32 1.1754944e-38, %v441_v3  ;;  %v701_v2 = vld [vmem:[%s2317_s18 + $0xd8] sm:$0xff]  ;;  %v698_v3 = vld [vmem:[%s2317_s18 + $0xc0] sm:$0xff] }
 0x2c8   :  { %v1404_v53 = vpop.eup %1403  ;;  %v345_v54 = vadd.f32 1.0, %v1402_v52 }
 0x2c9   :  { %v413_v55 = vadd.f32 1.0, %v1404_v53 }
 0x2ca   :  { %v1406_v56 = vpop.eup %1405  ;;  %1409 = vrcp.f32 %v345_v54  ;;  %v358_v16 = vand.u32 2147483648, %v345_v54  ;;  %v356_v18 = vand.u32 2147483647, %v345_v54  ;;  %vm352_vm14 = vweird.f32 %v345_v54 }
 0x2cb   :  { %v1408_v57 = vpop.eup %1407  ;;  %v363_v58 = vmul.f32 %v1406_v56, %v346_v48  ;;  %1411 = vrcp.f32 %v413_v55  ;;  %vm368_vm4 = vweird.f32 %v1406_v56  ;;  %v426_v21 = vand.u32 2147483648, %v413_v55 }
 0x2cc   :  { %v431_v59 = vmul.f32 %v1408_v57, %v414_v50  ;;  %vm436_vm7 = vweird.f32 %v1408_v57  ;;  %vm369_vm9 = vmor %vm367_vm5, %vm368_vm4  ;;  %v424_v27 = vand.u32 2147483647, %v413_v55  ;;  %vm420_vm15 = vweird.f32 %v413_v55 }
 0x2cd   :  { %v364_v60 = vsub.f32 1.0, %v363_v58  ;;  %vm437_vm11 = vmor %vm435_vm6, %vm436_vm7  ;;  %v359_v32 = vor.u32 1.1754944e-38, %v358_v16  ;;  %v427_v34 = vor.u32 1.1754944e-38, %v426_v21  ;;  %vm357_vm2 = vcmp.eq.f32.partialorder %v356_v18, 8.507059e+37  ;;  %v687_v16 = vld [vmem:[%s2317_s18 + $0x68] sm:$0xff]  ;;  %v685_v18 = vld [vmem:[%s2317_s18 + $0x58] sm:$0xff] }
 0x2ce   :  { %v432_v63 = vsub.f32 1.0, %v431_v59  ;;  %vm425_vm4 = vcmp.eq.f32.partialorder %v424_v27, 8.507059e+37  ;;  %v704_v59 = vld [vmem:[%s2317_s18 + $0xf0] sm:$0xff]  ;;  %v679_v27 = vld [vmem:[%s2317_s18 + $0x28] sm:$0xff] }
 0x2cf   :  { %v365_v4 = vmul.f32 %v1406_v56, %v364_v60  ;;  %v705_v60 = vld [vmem:[%s2317_s18 + $0xf8] sm:$0xff]  ;;  %712 = vmatpush.msra.mxu1 %v704_v59  ;;  %v680_v21 = vld [vmem:[%s2317_s18 + $0x30] sm:$0xff] }
 0x2d0   :  { %v1410_v6 = vpop.eup %1409  ;;  %v433_v7 = vmul.f32 %v1408_v57, %v432_v63  ;;  %732 = vmatpush.msra.mxu2 %v705_v60  ;;  %v700_v63 = vld [vmem:[%s2317_s18 + $0xd0] sm:$0xff] }
 0x2d1   :  { %v1412_v8 = vpop.eup %1411  ;;  %v348_v9 = vmul.f32 %v1410_v6, %v345_v54  ;;  %v366_v10 = vadd.f32 %v1406_v56, %v365_v4  ;;  %vm353_vm12 = vweird.f32 %v1410_v6  ;;  %713 = vmatpush.msra.mxu1 %v702_v61  ;;  %v699_v4 = vld [vmem:[%s2317_s18 + $0xc8] sm:$0xff] }
 0x2d2   :  { %v416_v12 = vmul.f32 %v1412_v8, %v413_v55  ;;  %v434_v13 = vadd.f32 %v1408_v57, %v433_v7  ;;  %vm421_vm13 = vweird.f32 %v1412_v8  ;;  %vm354_vm0 = vmor %vm352_vm14, %vm353_vm12  ;;  %733 = vmatpush.msra.mxu2 %v703_v62  ;;  %v694_v7 = vld [vmem:[%s2317_s18 + $0xa0] sm:$0xff]  ;;  %vm874_vm12 = vcmask 7168  }
 0x2d3   :  { %v349_v15 = vsub.f32 1.0, %v348_v9  ;;  %v370_v17 = vsel %vm369_vm9, %v1406_v56, %v366_v10  ;;  %vm422_vm1 = vmor %vm420_vm15, %vm421_vm13  ;;  %714 = vmatpush.msra.mxu1 %v700_v63  ;;  %v692_v9 = vld [vmem:[%s2317_s18 + $0x90] sm:$0xff]  ;;  %v693_v10 = vld [vmem:[%s2317_s18 + $0x98] sm:$0xff] }
 0x2d4   :  { %v375_v19 = vsel %vm372_vm8, %v374_v11, %v370_v17  ;;  %v417_v20 = vsub.f32 1.0, %v416_v12  ;;  %v438_v22 = vsel %vm437_vm11, %v1408_v57, %v434_v13  ;;  %734 = vmatpush.msra.mxu2 %v701_v2  ;;  %v690_v11 = vld [vmem:[%s2317_s18 + $0x80] sm:$0xff]  ;;  %v691_v12 = vld [vmem:[%s2317_s18 + $0x88] sm:$0xff]  ;;  %v688_v13 = vld [vmem:[%s2317_s18 + $0x70] sm:$0xff] }
 0x2d5   :  { %v350_v23 = vmul.f32 %v1410_v6, %v349_v15  ;;  %v382_v24 = vsub.f32 1.0, %v375_v19  ;;  %v443_v25 = vsel %vm440_vm10, %v442_v14, %v438_v22  ;;  %v378_v42 = vmul.f32 %v375_v19, %v1589_v1  ;;  %715 = vmatpush.msra.mxu1 %v698_v3  ;;  %v689_v14 = vld [vmem:[%s2317_s18 + $0x78] sm:$0xff]  ;;  %v686_v15 = vld [vmem:[%s2317_s18 + $0x60] sm:$0xff]  ;;  %v684_v17 = vld [vmem:[%s2317_s18 + $0x50] sm:$0xff] }
 0x2d6   :  { %v418_v26 = vmul.f32 %v1412_v8, %v417_v20  ;;  %v448_v28 = vsub.f32 1.0, %v443_v25  ;;  %v446_v43 = vmul.f32 %v443_v25, %v1589_v1  ;;  %735 = vmatpush.msra.mxu2 %v699_v4  ;;  %v682_v19 = vld [vmem:[%s2317_s18 + $0x40] sm:$0xff]  ;;  %v683_v20 = vld [vmem:[%s2317_s18 + $0x48] sm:$0xff]  ;;  %v681_v22 = vld [vmem:[%s2317_s18 + $0x38] sm:$0xff] }
 0x2d7   :  { %v351_v29 = vadd.f32 %v1410_v6, %v350_v23  ;;  %v384_v33 = vmul.f32 %v382_v24, %v380_v5 }
 0x2d8   :  { %v419_v31 = vadd.f32 %v1412_v8, %v418_v26  ;;  %v450_v37 = vmul.f32 %v448_v28, %v380_v5  ;;  %v696_v5 = vld [vmem:[%s2317_s18 + $0xb0] sm:$0xff]  ;;  %v678_v26 = vld [vmem:[%s2317_s18 + $0x20] sm:$0xff] }
 0x2d9   :  { %v355_v35 = vsel %vm354_vm0, %v1410_v6, %v351_v29  ;;  %v2080_v48 = vadd.f32 %v384_v33, %v378_v42  ;;  %v697_v6 = vld [vmem:[%s2317_s18 + $0xb8] sm:$0xff]  ;;  %716 = vmatpush.msra.mxu1 %v696_v5  ;;  %v676_v29 = vld [vmem:[%s2317_s18 + $0x10] sm:$0xff] }
 0x2da   :  { %v423_v36 = vsel %vm422_vm1, %v1412_v8, %v419_v31  ;;  %v360_v38 = vsel %vm357_vm2, %v359_v32, %v355_v35  ;;  %v2083_v52 = vadd.f32 %v450_v37, %v446_v43  ;;  %736 = vmatpush.msra.mxu2 %v697_v6  ;;  %v695_v8 = vld [vmem:[%s2317_s18 + $0xa8] sm:$0xff]  ;;  %v674_v31 = vld [vmem:[%s2317_s18] sm:$0xff] }
 0x2db   :  { %v428_v40 = vsel %vm425_vm4, %v427_v34, %v423_v36  ;;  %v381_v41 = vsub.f32 1.0, %v360_v38  ;;  %v377_v47 = vmul.f32 %v360_v38, %v1584_v0  ;;  %v456_v1 = vmul.f32 %v2080_v48, %v2080_v48  ;;  %717 = vmatpush.msra.mxu1 %v694_v7  ;;  %v675_v32 = vld [vmem:[%s2317_s18 + $0x8] sm:$0xff] }
 0x2dc   :  { %v447_v44 = vsub.f32 1.0, %v428_v40  ;;  %v445_v49 = vmul.f32 %v428_v40, %v1584_v0  ;;  %v476_v57 = vmul.f32 %v2083_v52, %v2083_v52  ;;  %737 = vmatpush.msra.mxu2 %v695_v8 }
 0x2dd   :  { %v383_v46 = vmul.f32 %v381_v41, %v379_v30  ;;  %718 = vmatpush.msra.mxu1 %v692_v9 }
 0x2de   :  { %v449_v50 = vmul.f32 %v447_v44, %v379_v30  ;;  %738 = vmatpush.msra.mxu2 %v693_v10  ;;  %v677_v30 = vld [vmem:[%s2317_s18 + $0x18] sm:$0xff] }
 0x2df   :  { %v2085_v53 = vadd.f32 %v383_v46, %v377_v47  ;;  %719 = vmatpush.msra.mxu1 %v690_v11 }
 0x2e0   :  { %v2087_v54 = vadd.f32 %v449_v50, %v445_v49  ;;  %739 = vmatpush.msra.mxu2 %v691_v12 }
 0x2e1   :  { %v455_v55 = vmul.f32 %v2085_v53, %v2085_v53  ;;  %720 = vmatpush.msra.mxu1 %v688_v13 }
 0x2e2   :  { %v475_v56 = vmul.f32 %v2087_v54, %v2087_v54  ;;  %740 = vmatpush.msra.mxu2 %v689_v14 }
 0x2e3   :  { %v457_v0 = vadd.f32 %v456_v1, %v455_v55  ;;  %721 = vmatpush.msra.mxu1 %v686_v15  ;;  %v1372_v55 = vld [vmem:[%s2312_s17] ss:$0 sm:$0xff] }
 0x2e4   :  { %v477_v58 = vadd.f32 %v476_v57, %v475_v56  ;;  %741 = vmatpush.msra.mxu2 %v687_v16 }
 0x2e5   :  { %458 = vadd.xlane.f32.xlu0 %v457_v0  ;;  %722 = vmatpush.msra.mxu1 %v684_v17 }
 0x2e6   :  { %478 = vadd.xlane.f32.xlu1 %v477_v58  ;;  %742 = vmatpush.msra.mxu2 %v685_v18 }
 0x2e7   :  { %723 = vmatpush.msra.mxu1 %v682_v19 }
 0x2e8   :  { %743 = vmatpush.msra.mxu2 %v683_v20 }
 0x2e9   :  { %724 = vmatpush.msra.mxu1 %v680_v21  ;;  %v792_v21 = vmul.f32 %v2070_v51, %v2070_v51 }
 0x2ea   :  { %744 = vmatpush.msra.mxu2 %v681_v22 }
 0x2eb   :  { %725 = vmatpush.msra.mxu1 %v678_v26  ;;  %v818_v22 = vsel %vm216_vm3, %v792_v21, 0.0 }
 0x2ec   :  { %745 = vmatpush.msra.mxu2 %v679_v27 }
 0x2ed   :  { %726 = vmatpush.msra.mxu1 %v676_v29 }
 0x2ee   :  { %746 = vmatpush.msra.mxu2 %v677_v30 }
 0x2ef   :  { %727 = vmatpush.msra.mxu1 %v674_v31 }
 0x2f0   :  { %747 = vmatpush.msra.mxu2 %v675_v32 }
 0x342   :  { %v670_v1 = vpop.f32.mrf.mxu0 }
 0x343   :  { %v671_v57 = vadd.f32 %v1372_v55, %v670_v1 }
 0x358   :  { %v459_v23 = vpop.xlane.xlu0 %458 }
 0x359   :  { %v479_v24 = vpop.xlane.xlu1 %478  ;;  %v460_v25 = vadd.f32 1e-12, %v459_v23 }
 0x35a   :  { %v480_v28 = vadd.f32 1e-12, %v479_v24 }
 0x35b   :  { %1413 = vrsqrt.f32 %v460_v25  ;;  %vm467_vm6 = vweird.f32 %v460_v25 }
 0x35c   :  { %1415 = vrsqrt.f32 %v480_v28  ;;  %vm487_vm9 = vweird.f32 %v480_v28 }
 0x35d   :  { %1417 = vtanh.f32 %v671_v57 }
 0x361   :  { %v1414_v33 = vpop.eup %1413 }
 0x362   :  { %v1416_v34 = vpop.eup %1415  ;;  %v462_v35 = vmul.f32 %v1414_v33, %v460_v25  ;;  %vm468_vm5 = vweird.f32 %v1414_v33 }
 0x363   :  { %v482_v36 = vmul.f32 %v1416_v34, %v480_v28  ;;  %vm469_vm7 = vmor %vm467_vm6, %vm468_vm5  ;;  %vm488_vm8 = vweird.f32 %v1416_v34  ;;  %v1418_v59 = vpop.eup %1417 }
 0x364   :  { %v463_v37 = vmul.f32 %v1414_v33, %v462_v35  ;;  %vm489_vm10 = vmor %vm487_vm9, %vm488_vm8 }
 0x365   :  { %v483_v38 = vmul.f32 %v1416_v34, %v482_v36 }
 0x366   :  { %v464_v40 = vmul.f32 0.5, %v463_v37 }
 0x367   :  { %v484_v41 = vmul.f32 0.5, %v483_v38 }
 0x368   :  { %v465_v42 = vsub.f32 1.5, %v464_v40 }
 0x369   :  { %v485_v43 = vsub.f32 1.5, %v484_v41 }
 0x36a   :  { %v466_v44 = vmul.f32 %v1414_v33, %v465_v42 }
 0x36b   :  { %v486_v50 = vmul.f32 %v1416_v34, %v485_v43 }
 0x36c   :  { %v470_v46 = vsel %vm469_vm7, %v1414_v33, %v466_v44 }
 0x36d   :  { %v471_v47 = vmul.f32 %v470_v46, %v2085_v53  ;;  %v472_v49 = vmul.f32 %v470_v46, %v2080_v48  ;;  %v490_v56 = vsel %vm489_vm10, %v1416_v34, %v486_v50 }
 0x36e   :  { %v491_v0 = vmul.f32 %v490_v56, %v2087_v54  ;;  %v492_v58 = vmul.f32 %v490_v56, %v2083_v52  ;;  %v706_v52 = vld [vmem:[%s2318_s19] sm:$0x3]  ;;  %s1471_s19 = smov 64  }
 0x36f   :  { %556 = vmatmul.f32.gmra.mxu1 %v471_v47  ;;  %582 = vmatmul.f32.gmra.mxu2 %v472_v49  ;;  %v708_v6 = vperm.slane %v706_v52, 0  ;;  %v709_v7 = vperm.slane %v706_v52, 1 }
 0x377   :  { %559 = vmatmul.f32.gmra.mxu1 %v491_v0  ;;  %585 = vmatmul.f32.gmra.mxu2 %v492_v58 }
 0x37f   :  { %728 = vmatmul.f32.vlgmr.msra.gmra.mxu1 %v1418_v59  ;;  %748 = vmatmul.f32.vlgmr.msra.gmra.mxu2 %v1418_v59 }
 0x3ec   :  { %v557_v60 = vpop.f32.mrf.mxu1 }
 0x3ed   :  { %v558_v61 = vadd.f32 %v2022_v39, %v557_v60 }
 0x3f2   :  { %v583_v62 = vpop.f32.mrf.mxu2 }
 0x3f3   :  { %v584_v63 = vadd.f32 %v583_v62, %v558_v61 }
 0x3f4   :  { %v560_v2 = vpop.f32.mrf.mxu1 }
 0x3f5   :  { %1419 = vtanh.f32 %v584_v63  ;;  %v561_v3 = vadd.f32 %v2022_v39, %v560_v2  ;;  %v1472_v63 = vmov 0.2  }
 0x3fa   :  { %v586_v4 = vpop.f32.mrf.mxu2 }
 0x3fb   :  { %v1420_v5 = vpop.eup %1419  ;;  %v587_v54 = vadd.f32 %v586_v4, %v561_v3 }
 0x3fc   :  { %631 = vmatmul.f32.gmra.mxu3 %v1420_v5  ;;  %v729_v8 = vpop.f32.mrf.mxu1 }
 0x3fd   :  { %1421 = vtanh.f32 %v587_v54  ;;  %v2205_v11 = vadd.f32 %v729_v8, %v708_v6 }
 0x402   :  { %v749_v9 = vpop.f32.mrf.mxu2 }
 0x403   :  { %v1422_v10 = vpop.eup %1421  ;;  %v2207_v12 = vadd.f32 %v749_v9, %v709_v7 }
 0x404   :  { %634 = vmatmul.f32.gmra.mxu3 %v1422_v10 }
 0x405   :  { %v752_v39 = vmax.f32 %v2205_v11, %v2207_v12 }
 0x407   :  { %753 = vmax.xlane.f32.xlu0 %v752_v39 }
 0x47f   :  { %v632_v13 = vpop.f32.mrf.mxu3 }
 0x480   :  { %v633_v14 = vadd.f32 %v2067_v45, %v632_v13 }
 0x482   :  { %1327 = vmatpush.xpose.msk.msrb.mxu0 %vm216_vm3, %v633_v14  ;;  %v834_v15 = vmul.f32 %v633_v14, %v633_v14 }
 0x484   :  { %v835_v16 = vsel %vm216_vm3, %v834_v15, 0.0 }
 0x485   :  { %1328 = vmatmul.msk.f32.vlgmr.msrb.gmra.mxu0 %vm216_vm3, %v2070_v51  ;;  %836 = vadd.xlane.f32.xlu1 %v835_v16 }
 0x487   :  { %v635_v17 = vpop.f32.mrf.mxu3 }
 0x488   :  { %v636_v18 = vadd.f32 %v2067_v45, %v635_v17 }
 0x48a   :  { %v1016_v19 = vmul.f32 %v636_v18, %v636_v18 }
 0x48c   :  { %v1017_v20 = vsel %vm216_vm3, %v1016_v19, 0.0 }
 0x48d   :  { %1018 = vadd.xlane.f32.xlu2 %v1017_v20 }
 0x495   :  { %819 = vadd.xlane.f32.xlu2 %v818_v22 }
 0x49e   :  { %794 = vrot.lane.b32.xlu1 %v792_v21, %s1471_s19 }
 0x4f8   :  { %v837_v23 = vpop.xlane.xlu1 %836 }
 0x4f9   :  { %v838_v24 = vadd.f32 1e-12, %v837_v23 }
 0x4fb   :  { %1423 = vrsqrt.f32 %v838_v24  ;;  %vm846_vm11 = vcmp.eq.f32.partialorder %v838_v24, inf  ;;  %v849_v38 = vand.u32 2147483648, %v838_v24  ;;  %vm848_vm13 = vcmp.eq.f32.partialorder %v838_v24, 0.0 }
 0x500   :  { %v1019_v25 = vpop.xlane.xlu2 %1018 }
 0x501   :  { %v1424_v26 = vpop.eup %1423  ;;  %v1020_v27 = vadd.f32 1e-12, %v1019_v25 }
 0x502   :  { %v840_v45 = vmul.f32 %v1424_v26, %v838_v24  ;;  %v871_v2 = vpop.f32.mrf.mxu0 }
 0x503   :  { %1425 = vrsqrt.f32 %v1020_v27  ;;  %vm1028_vm14 = vcmp.eq.f32.partialorder %v1020_v27, inf  ;;  %v1031_v55 = vand.u32 2147483648, %v1020_v27  ;;  %vm1030_vm15 = vcmp.eq.f32.partialorder %v1020_v27, 0.0 }
 0x504   :  { %v841_v28 = vmul.f32 %v1424_v26, %v840_v45 }
 0x506   :  { %v842_v29 = vmul.f32 0.5, %v841_v28  ;;  %v926_v28 = vlaneseq }
 0x508   :  { %v820_v30 = vpop.xlane.xlu2 %819  ;;  %v843_v31 = vsub.f32 1.5, %v842_v29 }
 0x509   :  { %v1426_v32 = vpop.eup %1425  ;;  %v821_v33 = vadd.f32 1e-12, %v820_v30 }
 0x50a   :  { %v844_v34 = vmul.f32 %v1424_v26, %v843_v31  ;;  %v1022_v35 = vmul.f32 %v1426_v32, %v1020_v27 }
 0x50b   :  { %1427 = vrsqrt.f32 %v821_v33  ;;  %vm829_vm0 = vcmp.eq.f32.partialorder %v821_v33, inf  ;;  %v832_v60 = vand.u32 2147483648, %v821_v33  ;;  %vm831_vm1 = vcmp.eq.f32.partialorder %v821_v33, 0.0 }
 0x50c   :  { %v845_v36 = vmul.f32 %v844_v34, %v838_v24  ;;  %v1023_v37 = vmul.f32 %v1426_v32, %v1022_v35  ;;  %1429 = vrcp.f32 %v1472_v63  ;;  %v927_v35 = vshrl.u32 %v926_v28, 7 }
 0x50e   :  { %v847_v40 = vsel %vm846_vm11, %v838_v24, %v845_v36  ;;  %v1024_v41 = vmul.f32 0.5, %v1023_v37  ;;  %v2229_v36 = vand.u32 127, %v926_v28 }
 0x50f   :  { %v850_v42 = vsel %vm848_vm13, %v849_v38, %v847_v40  ;;  %v2232_v40 = vpop.xlane.xlu0 %753 }
 0x510   :  { %1329 = vmatpush.xpose.msk.msra.mxu0 %vm874_vm12, %v850_v42  ;;  %v1025_v43 = vsub.f32 1.5, %v1024_v41  ;;  %vm930_vm13 = vcmp.eq.s32.totalorder %v927_v35, %v2229_v36  ;;  %v1473_v41 = vmov 0.0  }
 0x511   :  { %v1428_v44 = vpop.eup %1427  ;;  %v1331_v42 = vsel %vm930_vm13, 1.0, %v1473_v41 }
 0x512   :  { %v1026_v46 = vmul.f32 %v1426_v32, %v1025_v43  ;;  %v823_v47 = vmul.f32 %v1428_v44, %v821_v33  ;;  %v1430_v3 = vpop.eup %1429 }
 0x513   :  { %v917_v4 = vmul.f32 0.2, %v1430_v3  ;;  %vm921_vm4 = vweird.f32 %v1430_v3 }
 0x514   :  { %1332 = vmatpush.xpose.msk.msrb.mxu0 %vm216_vm3, %v636_v18  ;;  %v1027_v49 = vmul.f32 %v1026_v46, %v1020_v27  ;;  %v824_v50 = vmul.f32 %v1428_v44, %v823_v47  ;;  %v756_v47 = vsub.f32 %v2207_v12, %v2232_v40 }
 0x515   :  { %v918_v52 = vsub.f32 1.0, %v917_v4 }
 0x516   :  { %v1029_v1 = vsel %vm1028_vm14, %v1020_v27, %v1027_v49  ;;  %v825_v56 = vmul.f32 0.5, %v824_v50  ;;  %vm934_vm14 = vcmask 64512  }
 0x517   :  { %v1032_v57 = vsel %vm1030_vm15, %v1031_v55, %v1029_v1  ;;  %v919_v7 = vmul.f32 %v1430_v3, %v918_v52 }
 0x518   :  { %1334 = vmatpush.xpose.msk.msrb.mxu1 %vm874_vm12, %v1032_v57  ;;  %v826_v0 = vsub.f32 1.5, %v825_v56 }
 0x519   :  { %v920_v15 = vadd.f32 %v1430_v3, %v919_v7 }
 0x51a   :  { %v827_v58 = vmul.f32 %v1428_v44, %v826_v0  ;;  %v755_v44 = vsub.f32 %v2205_v11, %v2232_v40 }
 0x51b   :  { %v922_v25 = vsel %vm921_vm4, %v1430_v3, %v920_v15  ;;  %vm971_vm4 = vcmask 57344  }
 0x51c   :  { %v828_v59 = vmul.f32 %v827_v58, %v821_v33  ;;  %v757_v58 = vmul.f32 1.442695, %v755_v44 }
 0x51e   :  { %v830_v61 = vsel %vm829_vm0, %v821_v33, %v828_v59 }
 0x51f   :  { %v833_v62 = vsel %vm831_vm1, %v832_v60, %v830_v61 }
 0x520   :  { %1330 = vmatmul.msk.f32.vlgmr.msra.gmra.mxu0 %vm874_vm12, %v833_v62  ;;  %1335 = vmatmul.msk.f32.vlgmr.msrb.gmra.mxu1 %vm874_vm12, %v833_v62  ;;  %v759_v62 = vmul.f32 1.442695, %v756_v47 }
 0x528   :  { %1333 = vmatmul.msk.f32.vlgmr.msrb.gmra.mxu0 %vm216_vm3, %v2070_v51 }
 0x59d   :  { %v898_v5 = vpop.f32.mrf.mxu0  ;;  %v1076_v54 = vpop.f32.mrf.mxu1 }
 0x59e   :  { %1431 = vrcp.f32 %v898_v5  ;;  %v912_v13 = vand.u32 2147483648, %v898_v5  ;;  %v910_v17 = vand.u32 2147483647, %v898_v5  ;;  %v1090_v18 = vand.u32 2147483648, %v1076_v54 }
 0x59f   :  { %1433 = vrcp.f32 %v1076_v54  ;;  %v1088_v20 = vand.u32 2147483647, %v1076_v54  ;;  %vm906_vm6 = vweird.f32 %v898_v5  ;;  %vm1084_vm8 = vweird.f32 %v1076_v54 }
 0x5a0   :  { %v913_v22 = vor.u32 1.1754944e-38, %v912_v13  ;;  %vm911_vm9 = vcmp.eq.f32.partialorder %v910_v17, 8.507059e+37  ;;  %v1091_v26 = vor.u32 1.1754944e-38, %v1090_v18 }
 0x5a1   :  { %vm1089_vm11 = vcmp.eq.f32.partialorder %v1088_v20, 8.507059e+37 }
 0x5a4   :  { %v1432_v6 = vpop.eup %1431 }
 0x5a5   :  { %v1434_v8 = vpop.eup %1433  ;;  %v902_v9 = vmul.f32 %v1432_v6, %v898_v5  ;;  %vm907_vm2 = vweird.f32 %v1432_v6  ;;  %v1053_v30 = vpop.f32.mrf.mxu0 }
 0x5a6   :  { %v1080_v10 = vmul.f32 %v1434_v8, %v1076_v54  ;;  %vm1085_vm5 = vweird.f32 %v1434_v8  ;;  %vm908_vm7 = vmor %vm906_vm6, %vm907_vm2 }
 0x5a7   :  { %v903_v39 = vsub.f32 1.0, %v902_v9  ;;  %vm1086_vm10 = vmor %vm1084_vm8, %vm1085_vm5 }
 0x5a8   :  { %v1081_v14 = vsub.f32 1.0, %v1080_v10 }
 0x5a9   :  { %v904_v16 = vmul.f32 %v1432_v6, %v903_v39 }
 0x5aa   :  { %v1082_v19 = vmul.f32 %v1434_v8, %v1081_v14 }
 0x5ab   :  { %v905_v21 = vadd.f32 %v1432_v6, %v904_v16 }
 0x5ac   :  { %v1083_v23 = vadd.f32 %v1434_v8, %v1082_v19 }
 0x5ad   :  { %v909_v24 = vsel %vm908_vm7, %v1432_v6, %v905_v21 }
 0x5ae   :  { %v914_v27 = vsel %vm911_vm9, %v913_v22, %v909_v24  ;;  %v1087_v45 = vsel %vm1086_vm10, %v1434_v8, %v1083_v23  ;;  %v798_v22 = vmul.f32 1.442695, %v2070_v51 }
 0x5af   :  { %v915_v29 = vmul.f32 %v914_v27, %v871_v2  ;;  %v1092_v31 = vsel %vm1089_vm11, %v1091_v26, %v1087_v45  ;;  %v795_v26 = vpop.permute.xlu1 %794  ;;  %v791_v27 = vadd.f32 1.0, %v2070_v51 }
 0x5b0   :  { %v1093_v32 = vmul.f32 %v1092_v31, %v1053_v30 }
 0x5b1   :  { %v923_v33 = vmul.f32 %v922_v25, %v915_v29  ;;  %v797_v28 = vsub.f32 %v791_v27, %v795_v26  ;;  %v1214_v26 = vand.u32 2147483647, %v2085_v53 }
 0x5b2   :  { %v1094_v34 = vmul.f32 %v1093_v32, %v922_v25 }
 0x5b3   :  { %v924_v37 = vmul.f32 1.442695, %v923_v33 }
 0x5b4   :  { %v1095_v38 = vmul.f32 1.442695, %v1094_v34 }
 0x5b5   :  { %1435 = vpow2.f32 %v924_v37 }
 0x5b6   :  { %1437 = vpow2.f32 %v1095_v38 }
 0x5b7   :  { %1439 = vpow2.f32 %v757_v58 }
 0x5b8   :  { %1441 = vpow2.f32 %v759_v62 }
 0x5bb   :  { %v1436_v43 = vpop.eup %1435 }
 0x5bc   :  { %v1438_v46 = vpop.eup %1437  ;;  %v944_v49 = vsel %vm934_vm14, %v1436_v43, 0.0  ;;  %v933_v50 = vmul.f32 %v1436_v43, %v1331_v42 }
 0x5bd   :  { %945 = vadd.xlane.f32.xlu0 %v944_v49  ;;  %v947_v55 = vrot.slane %v944_v49, 4  ;;  %v1107_v1 = vsel %vm934_vm14, %v1438_v46, 0.0  ;;  %v1097_v56 = vmul.f32 %v1438_v46, %v1331_v42  ;;  %v1440_v16 = vpop.eup %1439 }
 0x5be   :  { %v935_v57 = vsel %vm934_vm14, %v933_v50, 0.0  ;;  %v1110_v0 = vrot.slane %v1107_v1, 4  ;;  %v1442_v19 = vpop.eup %1441 }
 0x5bf   :  { %v948_v59 = vadd.f32 %v947_v55, %v944_v49  ;;  %936 = vadd.xlane.f32.xlu2 %v935_v57  ;;  %v938_v60 = vrot.slane %v935_v57, 4  ;;  %v1098_v61 = vsel %vm934_vm14, %v1097_v56, 0.0  ;;  %v761_v24 = vadd.f32 %v1442_v19, %v1440_v16 }
 0x5c0   :  { %v1111_v63 = vadd.f32 %v1110_v0, %v1107_v1  ;;  %v1101_v2 = vrot.slane %v1098_v61, 4 }
 0x5c1   :  { %v949_v3 = vrot.slane %v948_v59, 2  ;;  %v939_v4 = vadd.f32 %v938_v60, %v935_v57 }
 0x5c2   :  { %v1112_v5 = vrot.slane %v1111_v63, 2  ;;  %v1102_v54 = vadd.f32 %v1101_v2, %v1098_v61 }
 0x5c3   :  { %v950_v52 = vadd.f32 %v949_v3, %v948_v59  ;;  %v940_v6 = vrot.slane %v939_v4, 2 }
 0x5c4   :  { %v1113_v7 = vadd.f32 %v1112_v5, %v1111_v63  ;;  %v1103_v8 = vrot.slane %v1102_v54, 2 }
 0x5c5   :  { %v951_v9 = vrot.slane %v950_v52, 1  ;;  %v941_v10 = vadd.f32 %v940_v6, %v939_v4  ;;  %1108 = vadd.xlane.f32.xlu0 %v1107_v1 }
 0x5c6   :  { %v1104_v39 = vadd.f32 %v1103_v8, %v1102_v54  ;;  %v1114_v14 = vrot.slane %v1113_v7, 1 }
 0x5c7   :  { %v942_v13 = vrot.slane %v941_v10, 1  ;;  %1099 = vadd.xlane.f32.xlu2 %v1098_v61  ;;  %v952_v17 = vadd.f32 %v951_v9, %v950_v52 }
 0x5c8   :  { %v1105_v15 = vrot.slane %v1104_v39, 1  ;;  %v1115_v23 = vadd.f32 %v1114_v14, %v1113_v7 }
 0x5c9   :  { %v943_v18 = vadd.f32 %v942_v13, %v941_v10 }
 0x5ca   :  { %v1106_v20 = vadd.f32 %v1105_v15, %v1104_v39 }
 0x5cb   :  { %v953_v21 = vsub.f32 %v952_v17, %v943_v18  ;;  %v1469_v17 = vld [vmem:[%s2330_s23] sm:$0xff] }
 0x5cc   :  { %v1116_v25 = vsub.f32 %v1115_v23, %v1106_v20  ;;  %vm1178_vm10 = vcmp.eq.f32.partialorder %v1469_v17, 0.0 }
 0x5cd   :  { %1443 = vrcp.f32 %v953_v21  ;;  %v965_v33 = vand.u32 2147483648, %v953_v21  ;;  %v963_v37 = vand.u32 2147483647, %v953_v21  ;;  %vm959_vm0 = vweird.f32 %v953_v21 }
 0x5ce   :  { %1445 = vpow2.f32 %v798_v22  ;;  %v1128_v56 = vand.u32 2147483648, %v1116_v25  ;;  %vm1122_vm6 = vweird.f32 %v1116_v25  ;;  %v1126_v57 = vand.u32 2147483647, %v1116_v25 }
 0x5cf   :  { %762 = vadd.xlane.f32.xlu2 %v761_v24  ;;  %1447 = vrcp.f32 %v1116_v25  ;;  %v966_v43 = vor.u32 1.1754944e-38, %v965_v33  ;;  %vm964_vm2 = vcmp.eq.f32.partialorder %v963_v37, 8.507059e+37  ;;  %v1470_v24 = vld [vmem:[%s2330_s23 + $0x8] sm:$0xff] }
 0x5d0   :  { %v1129_v59 = vor.u32 1.1754944e-38, %v1128_v56  ;;  %vm1127_vm8 = vcmp.eq.f32.partialorder %v1126_v57, 8.507059e+37  ;;  %vm1179_vm14 = vcmp.eq.f32.partialorder %v1470_v24, 0.0 }
 0x5d3   :  { %v1444_v45 = vpop.eup %1443 }
 0x5d4   :  { %v955_v29 = vmul.f32 %v1444_v45, %v953_v21  ;;  %v1446_v30 = vpop.eup %1445  ;;  %vm960_vm15 = vweird.f32 %v1444_v45 }
 0x5d5   :  { %v800_v32 = vsub.f32 %v797_v28, %v1446_v30  ;;  %v1448_v34 = vpop.eup %1447  ;;  %vm961_vm1 = vmor %vm959_vm0, %vm960_vm15 }
 0x5d6   :  { %v956_v31 = vsub.f32 1.0, %v955_v29  ;;  %v1118_v42 = vmul.f32 %v1448_v34, %v1116_v25  ;;  %vm1123_vm5 = vweird.f32 %v1448_v34  ;;  %v1336_v25 = vsel %vm1178_vm10, 1.0, %v1473_v41 }
 0x5d7   :  { %vm1124_vm7 = vmor %vm1122_vm6, %vm1123_vm5  ;;  %v1216_v37 = vmul.f32 %v1336_v25, %v1214_v26  ;;  %vm1185_vm5 = vcmp.eq.f32.partialorder %v1470_v24, 1.0 }
 0x5d8   :  { %v957_v35 = vmul.f32 %v1444_v45, %v956_v31  ;;  %v1119_v47 = vsub.f32 1.0, %v1118_v42  ;;  %v1215_v31 = vand.u32 2147483647, %v2080_v48 }
 0x5d9   :  { %802 = vrot.lane.b32.xlu0 %v800_v32, %s1471_s19 }
 0x5da   :  { %v958_v38 = vadd.f32 %v1444_v45, %v957_v35  ;;  %v1120_v49 = vmul.f32 %v1448_v34, %v1119_v47 }
 0x5dc   :  { %v962_v51 = vsel %vm961_vm1, %v1444_v45, %v958_v38  ;;  %v1121_v55 = vadd.f32 %v1448_v34, %v1120_v49 }
 0x5dd   :  { %v967_v44 = vsel %vm964_vm2, %v966_v43, %v962_v51 }
 0x5de   :  { %v968_v46 = vmul.f32 %v967_v44, %v943_v18  ;;  %v1125_v58 = vsel %vm1124_vm7, %v1448_v34, %v1121_v55  ;;  %v1337_v34 = vsel %vm1179_vm14, 1.0, %v1473_v41 }
 0x5df   :  { %v1130_v60 = vsel %vm1127_vm8, %v1129_v59, %v1125_v58  ;;  %v1217_v51 = vmul.f32 %v1337_v34, %v1215_v31 }
 0x5e0   :  { %1449 = vlog2.f32 %v968_v46  ;;  %v1131_v61 = vmul.f32 %v1130_v60, %v1106_v20 }
 0x5e1   :  { %v1218_v49 = vadd.f32 %v1217_v51, %v1216_v37 }
 0x5e2   :  { %1451 = vlog2.f32 %v1131_v61  ;;  %v1190_v61 = vadd.f32 %v1337_v34, %v1336_v25 }
 0x5e6   :  { %v1450_v50 = vpop.eup %1449 }
 0x5e7   :  { %v970_v1 = vmul.f32 0.6931472, %v1450_v50 }
 0x5e8   :  { %v1452_v62 = vpop.eup %1451 }
 0x5e9   :  { %v2247_v0 = vsel %vm971_vm4, %v970_v1, 0.0  ;;  %v1133_v63 = vmul.f32 0.6931472, %v1452_v62  ;;  %v1244_v62 = vsub.f32 1.0, %v2085_v53 }
 0x5eb   :  { %v1134_v2 = vsel %vm971_vm4, %v1133_v63, 0.0  ;;  %vm1184_vm4 = vcmp.eq.f32.partialorder %v1469_v17, 1.0 }
 0x5ec   :  { %v1338_v63 = vsel %vm1184_vm4, 1.0, %v1473_v41  ;;  %vm1304_vm4 = vcmp.eq.s32.totalorder %v2229_v36, 5 }
 0x603   :  { %1135 = vadd.xlane.f32.xlu0 %v1134_v2 }
 0x630   :  { %v946_v3 = vpop.xlane.xlu0 %945 }
 0x632   :  { %v937_v4 = vpop.xlane.xlu2 %936 }
 0x633   :  { %v984_v5 = vsub.f32 %v946_v3, %v937_v4  ;;  %v1245_v3 = vsub.f32 1.0, %v2080_v48 }
 0x635   :  { %1453 = vrcp.f32 %v984_v5  ;;  %v996_v19 = vand.u32 2147483648, %v984_v5  ;;  %vm990_vm11 = vweird.f32 %v984_v5  ;;  %v994_v20 = vand.u32 2147483647, %v984_v5 }
 0x637   :  { %v997_v30 = vor.u32 1.1754944e-38, %v996_v19  ;;  %vm995_vm15 = vcmp.eq.f32.partialorder %v994_v20, 8.507059e+37 }
 0x638   :  { %v1109_v54 = vpop.xlane.xlu0 %1108 }
 0x63a   :  { %v1100_v52 = vpop.xlane.xlu2 %1099 }
 0x63b   :  { %v1454_v6 = vpop.eup %1453  ;;  %v1146_v7 = vsub.f32 %v1109_v54, %v1100_v52 }
 0x63c   :  { %v986_v8 = vmul.f32 %v1454_v6, %v984_v5  ;;  %vm991_vm9 = vweird.f32 %v1454_v6  ;;  %v1247_v5 = vand.u32 2147483647, %v1245_v3 }
 0x63d   :  { %1455 = vrcp.f32 %v1146_v7  ;;  %vm2253_vm13 = vmor %vm990_vm11, %vm991_vm9  ;;  %v1156_v46 = vand.u32 2147483647, %v1146_v7 }
 0x63e   :  { %v987_v9 = vsub.f32 1.0, %v986_v8 }
 0x63f   :  { %vm1157_vm2 = vcmp.eq.f32.partialorder %v1156_v46, 8.507059e+37 }
 0x640   :  { %v988_v13 = vmul.f32 %v1454_v6, %v987_v9 }
 0x642   :  { %v763_v10 = vpop.xlane.xlu2 %762  ;;  %v989_v15 = vadd.f32 %v1454_v6, %v988_v13 }
 0x643   :  { %v1456_v39 = vpop.eup %1455  ;;  %1457 = vlog2.f32 %v763_v10 }
 0x644   :  { %v1148_v14 = vmul.f32 %v1456_v39, %v1146_v7  ;;  %v993_v27 = vsel %vm2253_vm13, %v1454_v6, %v989_v15  ;;  %vm1153_vm0 = vweird.f32 %v1456_v39 }
 0x645   :  { %v998_v35 = vsel %vm995_vm15, %v997_v30, %v993_v27  ;;  %vm1283_vm15 = vcmp.eq.s32.totalorder %v2229_v36, 0 }
 0x646   :  { %v1149_v16 = vsub.f32 1.0, %v1148_v14  ;;  %v999_v44 = vmul.f32 %v998_v35, %v937_v4  ;;  %v1246_v4 = vand.u32 2147483647, %v1244_v62 }
 0x648   :  { %v1150_v45 = vmul.f32 %v1456_v39, %v1149_v16  ;;  %1459 = vlog2.f32 %v999_v44  ;;  %v1248_v54 = vmul.f32 %v1338_v63, %v1246_v4 }
 0x649   :  { %v1458_v18 = vpop.eup %1457 }
 0x64a   :  { %v765_v21 = vmul.f32 0.6931472, %v1458_v18  ;;  %v1151_v38 = vadd.f32 %v1456_v39, %v1150_v45 }
 0x64b   :  { %v803_v23 = vpop.permute.xlu0 %802 }
 0x64c   :  { %v766_v28 = vadd.f32 %v765_v21, %v2232_v40  ;;  %v805_v29 = vsel %vm216_vm3, %v803_v23, 0.0  ;;  %v1158_v40 = vand.u32 2147483648, %v1146_v7  ;;  %vm1152_vm3 = vweird.f32 %v1146_v7 }
 0x64d   :  { %806 = vadd.xlane.f32.xlu1 %v805_v29  ;;  %vm1154_vm1 = vmor %vm1152_vm3, %vm1153_vm0  ;;  %vm1292_vm0 = vcmp.eq.s32.totalorder %v2229_v36, 1  ;;  %vm1295_vm3 = vcmp.eq.s32.totalorder %v2229_v36, 2 }
 0x64e   :  { %v767_v32 = vsub.f32 %v2205_v11, %v766_v28  ;;  %v768_v33 = vsub.f32 %v2207_v12, %v766_v28  ;;  %v1155_v50 = vsel %vm1154_vm1, %v1456_v39, %v1151_v38  ;;  %v1159_v11 = vor.u32 1.1754944e-38, %v1158_v40  ;;  %v1460_v1 = vpop.eup %1459 }
 0x64f   :  { %v1001_v56 = vmul.f32 0.6931472, %v1460_v1  ;;  %vm1298_vm1 = vcmp.eq.s32.totalorder %v2229_v36, 3 }
 0x650   :  { %v769_v42 = vmul.f32 %v1469_v17, %v767_v32  ;;  %v770_v43 = vmul.f32 %v1470_v24, %v768_v33  ;;  %v1160_v12 = vsel %vm1157_vm2, %v1159_v11, %v1155_v50  ;;  %vm1301_vm2 = vcmp.eq.s32.totalorder %v2229_v36, 4 }
 0x651   :  { %v1161_v55 = vmul.f32 %v1160_v12, %v1100_v52  ;;  %v1002_v57 = vsel %vm874_vm12, %v1001_v56, 0.0 }
 0x652   :  { %v771_v47 = vadd.f32 %v770_v43, %v769_v42 }
 0x653   :  { %1461 = vlog2.f32 %v1161_v55 }
 0x654   :  { %772 = vadd.xlane.f32.xlu2 %v771_v47  ;;  %v25_v47 = vstv %s2319_s3 }
 0x655   :  { %1219 = vadd.xlane.f32.xlu1 %v1218_v49  ;;  %26 = vst [vmem:[#allocation3] sm:$0x1] %v25_v47 }
 0x659   :  { %v1462_v58 = vpop.eup %1461 }
 0x65a   :  { %v1163_v59 = vmul.f32 0.6931472, %v1462_v58 }
 0x65c   :  { %973 = vadd.xlane.f32.xlu2 %v2247_v0  ;;  %v1164_v60 = vsel %vm874_vm12, %v1163_v59, 0.0  ;;  %v1339_v0 = vsel %vm1185_vm5, 1.0, %v1473_v41  ;;  %vm1307_vm5 = vcmp.eq.s32.totalorder %v2229_v36, 6 }
 0x65d   :  { %v1202_v2 = vadd.f32 %v1339_v0, %v1338_v63  ;;  %v1249_v52 = vmul.f32 %v1339_v0, %v1247_v5  ;;  %v1474_v5 = vmov 8.0  }
 0x65e   :  { %1463 = vrcp.f32 %v1474_v5 }
 0x65f   :  { %v1250_v6 = vadd.f32 %v1249_v52, %v1248_v54 }
 0x664   :  { %1003 = vadd.xlane.f32.xlu2 %v1002_v57 }
 0x66c   :  { %1165 = vadd.xlane.f32.xlu2 %v1164_v60 }
 0x674   :  { %1191 = vadd.xlane.f32.xlu2 %v1190_v61 }
 0x676   :  { %v1136_v15 = vpop.xlane.xlu0 %1135 }
 0x677   :  { %v1137_v17 = vrot.slane %v1136_v15, 4 }
 0x679   :  { %v1138_v23 = vadd.f32 %v1137_v17, %v1136_v15 }
 0x67b   :  { %v1139_v27 = vrot.slane %v1138_v23, 2 }
 0x67c   :  { %1203 = vadd.xlane.f32.xlu2 %v1202_v2 }
 0x67d   :  { %v1140_v32 = vadd.f32 %v1139_v27, %v1138_v23 }
 0x67f   :  { %v1141_v37 = vrot.slane %v1140_v32, 1 }
 0x681   :  { %v1142_v51 = vadd.f32 %v1141_v37, %v1140_v32 }
 0x684   :  { %1251 = vadd.xlane.f32.xlu2 %v1250_v6 }
 0x6c0   :  { %v807_v7 = vpop.xlane.xlu1 %806 }
 0x6c1   :  { %v808_v8 = vrot.slane %v807_v7, 4 }
 0x6c3   :  { %v809_v9 = vadd.f32 %v808_v8, %v807_v7 }
 0x6c5   :  { %v810_v10 = vrot.slane %v809_v9, 2 }
 0x6c7   :  { %v773_v39 = vpop.xlane.xlu2 %772  ;;  %v811_v14 = vadd.f32 %v810_v10, %v809_v9 }
 0x6c8   :  { %v774_v53 = vrot.slane %v773_v39, 4  ;;  %v1220_v44 = vpop.xlane.xlu1 %1219 }
 0x6c9   :  { %v812_v18 = vrot.slane %v811_v14, 1  ;;  %v1221_v50 = vrot.slane %v1220_v44, 4 }
 0x6ca   :  { %v775_v13 = vadd.f32 %v774_v53, %v773_v39  ;;  %v1464_v39 = vpop.eup %1463 }
 0x6cb   :  { %v813_v24 = vadd.f32 %v812_v18, %v811_v14  ;;  %v1222_v57 = vadd.f32 %v1221_v50, %v1220_v44  ;;  %v784_v15 = vmul.f32 8.0, %v1464_v39  ;;  %vm788_vm12 = vweird.f32 %v1464_v39 }
 0x6cc   :  { %v776_v41 = vrot.slane %v775_v13, 2 }
 0x6cd   :  { %v1223_v60 = vrot.slane %v1222_v57, 2  ;;  %v785_v17 = vsub.f32 1.0, %v784_v15 }
 0x6ce   :  { %v777_v16 = vadd.f32 %v776_v41, %v775_v13 }
 0x6cf   :  { %v974_v48 = vpop.xlane.xlu2 %973  ;;  %v1224_v3 = vadd.f32 %v1223_v60, %v1222_v57 }
 0x6d0   :  { %v975_v19 = vrot.slane %v974_v48, 4  ;;  %v778_v20 = vrot.slane %v777_v16, 1 }
 0x6d1   :  { %v1225_v6 = vrot.slane %v1224_v3, 1 }
 0x6d2   :  { %v976_v21 = vadd.f32 %v975_v19, %v974_v48  ;;  %v779_v22 = vadd.f32 %v778_v20, %v777_v16  ;;  %v786_v48 = vmul.f32 %v1464_v39, %v785_v17  ;;  %v1475_v19 = vmov 0  }
 0x6d3   :  { %v1226_v53 = vadd.f32 %v1225_v6, %v1224_v3  ;;  %1365 = vset.pattern.permute.xlu1 %v1475_v19  ;;  %1366 = vset.pattern.permute.xlu0 %v1475_v19 }
 0x6d4   :  { %v977_v25 = vrot.slane %v976_v21, 2  ;;  %1340 = vpush %v779_v22  ;;  %v787_v18 = vadd.f32 %v1464_v39, %v786_v48 }
 0x6d5   :  { %1342 = vpush %v813_v24 }
 0x6d6   :  { %v978_v26 = vadd.f32 %v977_v25, %v976_v21  ;;  %v789_v20 = vsel %vm788_vm12, %v1464_v39, %v787_v18  ;;  %vm1310_vm12 = vcmp.eq.s32.totalorder %v2229_v36, 7 }
 0x6d7   :  { %v1004_v45 = vpop.xlane.xlu2 %1003 }
 0x6d8   :  { %v1005_v28 = vrot.slane %v1004_v45, 4  ;;  %v979_v29 = vrot.slane %v978_v26, 1 }
 0x6da   :  { %v1006_v30 = vadd.f32 %v1005_v28, %v1004_v45  ;;  %v980_v31 = vadd.f32 %v979_v29, %v978_v26 }
 0x6dc   :  { %v1007_v33 = vrot.slane %v1006_v30, 2  ;;  %1344 = vpush %v980_v31 }
 0x6de   :  { %v1008_v34 = vadd.f32 %v1007_v33, %v1006_v30  ;;  %v1277_v30 = vld [vmem:[#allocation3] sm:$0x1] }
 0x6df   :  { %v1166_v35 = vpop.xlane.xlu2 %1165 }
 0x6e0   :  { %v1167_v38 = vrot.slane %v1166_v35, 4  ;;  %v1009_v42 = vrot.slane %v1008_v34, 1 }
 0x6e2   :  { %v1168_v43 = vadd.f32 %v1167_v38, %v1166_v35  ;;  %v1010_v40 = vadd.f32 %v1009_v42, %v1008_v34 }
 0x6e4   :  { %v1169_v46 = vrot.slane %v1168_v43, 2  ;;  %1346 = vpush %v1010_v40 }
 0x6e5   :  { %1348 = vpush %v1142_v51 }
 0x6e6   :  { %v1170_v49 = vadd.f32 %v1169_v46, %v1168_v43 }
 0x6e7   :  { %v1192_v11 = vpop.xlane.xlu2 %1191 }
 0x6e8   :  { %v1193_v12 = vrot.slane %v1192_v11, 4  ;;  %v1171_v55 = vrot.slane %v1170_v49, 1 }
 0x6ea   :  { %v1194_v1 = vadd.f32 %v1193_v12, %v1192_v11  ;;  %v1172_v56 = vadd.f32 %v1171_v55, %v1170_v49 }
 0x6ec   :  { %v1195_v58 = vrot.slane %v1194_v1, 2  ;;  %1350 = vpush %v1172_v56 }
 0x6ee   :  { %v1196_v59 = vadd.f32 %v1195_v58, %v1194_v1 }
 0x6ef   :  { %v1204_v61 = vpop.xlane.xlu2 %1203 }
 0x6f0   :  { %v1205_v62 = vrot.slane %v1204_v61, 4  ;;  %v1197_v63 = vrot.slane %v1196_v59, 1 }
 0x6f2   :  { %v1206_v0 = vadd.f32 %v1205_v62, %v1204_v61  ;;  %v1198_v2 = vadd.f32 %v1197_v63, %v1196_v59 }
 0x6f4   :  { %v1207_v4 = vrot.slane %v1206_v0, 2  ;;  %1352 = vpush %v1198_v2 }
 0x6f6   :  { %v1208_v54 = vadd.f32 %v1207_v4, %v1206_v0 }
 0x6f7   :  { %v1252_v52 = vpop.xlane.xlu2 %1251 }
 0x6f8   :  { %v1253_v7 = vrot.slane %v1252_v52, 4  ;;  %v1209_v8 = vrot.slane %v1208_v54, 1 }
 0x6fa   :  { %v1254_v9 = vadd.f32 %v1253_v7, %v1252_v52  ;;  %v1210_v10 = vadd.f32 %v1209_v8, %v1208_v54 }
 0x6fc   :  { %v1255_v13 = vrot.slane %v1254_v9, 2  ;;  %1354 = vpush %v1210_v10 }
 0x6fd   :  { %1356 = vpush %v1226_v53 }
 0x6fe   :  { %v1256_v14 = vadd.f32 %v1255_v13, %v1254_v9 }
 0x700   :  { %v1257_v41 = vrot.slane %v1256_v14, 1 }
 0x702   :  { %v1258_v16 = vadd.f32 %v1257_v41, %v1256_v14 }
 0x704   :  { %1358 = vpush %v1258_v16 }
 0x705   :  { %s1341_s3 = spop %1340 }
 0x706   :  { %s1343_s4 = spop %1342  ;;  %v781_v45 = vstv %s1341_s3 }
 0x707   :  { %v815_v23 = vstv %s1343_s4  ;;  %v782_v32 = vsub.f32 0.0, %v781_v45 }
 0x708   :  { %v816_v26 = vmul.f32 -0.5, %v815_v23 }
 0x709   :  { %v2283_v38 = vmul.f32 %v789_v20, %v782_v32 }
 0x70a   :  { %v2280_v29 = vmul.f32 %v816_v26, %v789_v20 }
 0x70c   :  { %v1279_v35 = vmul.f32 %v1277_v30, %v2280_v29 }
 0x70d   :  { %s1345_s13 = spop %1344 }
 0x70e   :  { %v982_v21 = vstv %s1345_s13  ;;  %v1280_v43 = vadd.f32 %v1279_v35, %v2283_v38 }
 0x70f   :  { %v983_v22 = vmul.f32 %v982_v21, %v789_v20 }
 0x715   :  { %s1347_s11 = spop %1346 }
 0x716   :  { %v1012_v24 = vstv %s1347_s11  ;;  %s1349_s16 = spop %1348 }
 0x717   :  { %v1013_v25 = vmul.f32 %v1012_v24, %v789_v20  ;;  %v1144_v28 = vstv %s1349_s16 }
 0x718   :  { %v1145_v33 = vmul.f32 %v1144_v28, %v789_v20 }
 0x719   :  { %v1014_v27 = vadd.f32 %v1013_v25, %v983_v22  ;;  %v1305_v22 = vsel %vm1304_vm4, %v2280_v29, 0.0 }
 0x71b   :  { %v1015_v39 = vmul.f32 0.5, %v1014_v27 }
 0x71d   :  { %s1351_s15 = spop %1350  ;;  %v1299_v18 = vsel %vm1298_vm1, %v1015_v39, 0.0 }
 0x71e   :  { %v1174_v31 = vstv %s1351_s15 }
 0x71f   :  { %v1175_v34 = vmul.f32 %v1174_v31, %v789_v20  ;;  %v1302_v20 = vsel %vm1301_vm2, %v2283_v38, 0.0 }
 0x721   :  { %v1176_v37 = vadd.f32 %v1175_v34, %v1145_v33 }
 0x723   :  { %v1177_v42 = vmul.f32 0.5, %v1176_v37 }
 0x725   :  { %v1281_v40 = vmul.f32 0.5, %v1177_v42  ;;  %s1353_s8 = spop %1352  ;;  %v1296_v17 = vsel %vm1295_vm3, %v1177_v42, 0.0 }
 0x726   :  { %v1200_v46 = vstv %s1353_s8 }
 0x727   :  { %v1282_v51 = vsub.f32 %v1280_v43, %v1281_v40  ;;  %v1201_v49 = vmax.f32 %v1200_v46, 1.0 }
 0x729   :  { %1286 = vperm.xlu1 %1365, %v1282_v51   ;;  %vm1234_vm8 = vweird.f32 %v1201_v49  ;;  %v1240_v62 = vand.u32 2147483648, %v1201_v49  ;;  %v1238_v0 = vand.u32 2147483647, %v1201_v49 }
 0x72b   :  { %v1241_v4 = vor.u32 1.1754944e-38, %v1240_v62  ;;  %vm1239_vm14 = vcmp.eq.f32.partialorder %v1238_v0, 8.507059e+37 }
 0x72d   :  { %s1355_s22 = spop %1354 }
 0x72e   :  { %v1212_v44 = vstv %s1355_s22  ;;  %s1357_s12 = spop %1356 }
 0x72f   :  { %v1213_v47 = vmax.f32 %v1212_v44, 1.0  ;;  %v1228_v8 = vstv %s1357_s12 }
 0x731   :  { %1465 = vrcp.f32 %v1213_v47  ;;  %vm1266_vm6 = vweird.f32 %v1213_v47  ;;  %v1272_v59 = vand.u32 2147483648, %v1213_v47  ;;  %v1270_v61 = vand.u32 2147483647, %v1213_v47 }
 0x732   :  { %1467 = vrcp.f32 %v1201_v49 }
 0x733   :  { %v1273_v2 = vor.u32 1.1754944e-38, %v1272_v59  ;;  %vm1271_vm13 = vcmp.eq.f32.partialorder %v1270_v61, 8.507059e+37 }
 0x735   :  { %s1359_s25 = spop %1358 }
 0x736   :  { %v1260_v6 = vstv %s1359_s25 }
 0x737   :  { %v1466_v50 = vpop.eup %1465 }
 0x738   :  { %v1468_v11 = vpop.eup %1467  ;;  %v1262_v12 = vmul.f32 %v1466_v50, %v1213_v47  ;;  %vm1267_vm7 = vweird.f32 %v1466_v50 }
 0x739   :  { %v1230_v55 = vmul.f32 %v1468_v11, %v1201_v49  ;;  %vm1235_vm9 = vweird.f32 %v1468_v11  ;;  %vm1268_vm10 = vmor %vm1266_vm6, %vm1267_vm7  ;;  %vm1313_vm6 = vcmp.eq.s32.totalorder %v2229_v36, 8 }
 0x73a   :  { %v1263_v1 = vsub.f32 1.0, %v1262_v12  ;;  %vm1236_vm11 = vmor %vm1234_vm8, %vm1235_vm9 }
 0x73b   :  { %v1231_v56 = vsub.f32 1.0, %v1230_v55 }
 0x73c   :  { %v1264_v57 = vmul.f32 %v1466_v50, %v1263_v1 }
 0x73d   :  { %v1232_v58 = vmul.f32 %v1468_v11, %v1231_v56 }
 0x73e   :  { %v1265_v60 = vadd.f32 %v1466_v50, %v1264_v57 }
 0x73f   :  { %v1233_v63 = vadd.f32 %v1468_v11, %v1232_v58 }
 0x740   :  { %v1269_v3 = vsel %vm1268_vm10, %v1466_v50, %v1265_v60 }
 0x741   :  { %v1237_v5 = vsel %vm1236_vm11, %v1468_v11, %v1233_v63  ;;  %v1274_v54 = vsel %vm1271_vm13, %v1273_v2, %v1269_v3 }
 0x742   :  { %v1242_v52 = vsel %vm1239_vm14, %v1241_v4, %v1237_v5  ;;  %v1275_v7 = vmul.f32 %v1274_v54, %v1260_v6 }
 0x743   :  { %v1243_v9 = vmul.f32 %v1242_v52, %v1228_v8 }
 0x744   :  { %v1311_v26 = vsel %vm1310_vm12, %v1275_v7, 0.0 }
 0x745   :  { %v1276_v10 = vadd.f32 %v1275_v7, %v1243_v9  ;;  %v1314_v45 = vsel %vm1313_vm6, %v1243_v9, 0.0 }
 0x747   :  { %v1278_v53 = vadd.f32 %v1276_v10, %v1015_v39  ;;  %v1308_v24 = vsel %vm1307_vm5, %v1276_v10, 0.0 }
 0x749   :  { %v1293_v15 = vsel %vm1292_vm0, %v1278_v53, 0.0 }
 0x79b   :  { %v1287_v13 = vpop.permute.xlu1 %1286 }
 0x79c   :  { %v1289_v14 = vperm.slane %v1287_v13, 0 }
 0x79e   :  { %v1290_v41 = vsel %vm1283_vm15, %v1289_v14, 0.0 }
 0x79f   :  { %v1294_v16 = vadd.f32 %v1293_v15, %v1290_v41 }
 0x7a1   :  { %v1297_v48 = vadd.f32 %v1296_v17, %v1294_v16 }
 0x7a3   :  { %v1300_v19 = vadd.f32 %v1299_v18, %v1297_v48 }
 0x7a5   :  { %v1303_v21 = vadd.f32 %v1302_v20, %v1300_v19 }
 0x7a7   :  { %v1306_v23 = vadd.f32 %v1305_v22, %v1303_v21 }
 0x7a9   :  { %v1309_v25 = vadd.f32 %v1308_v24, %v1306_v23 }
 0x7ab   :  { %v1312_v27 = vadd.f32 %v1311_v26, %v1309_v25 }
 0x7ad   :  { %v1315_v28 = vadd.f32 %v1314_v45, %v1312_v27 }
 0x7af   :  { %1316 = vst [vmem:[%s2320_s20] sm:$0x1] %v1315_v28 }

</bundles_post_ra>
